<compile_context>
chip_gen: v7x
topology: tpu7x:2x2x1
jax: 0.10.0
libtpu: 0.0.40
codegen_flags: <defaults>
</compile_context>

<pallas_src>
import math

import numpy as np
import jax
import jax.numpy as jnp
from jax import lax
from jax.experimental import pallas as pl
from jax.experimental.pallas import tpu as pltpu

# ---------------- model hyper-parameters (small, consistent with forward) ----
BATCH = 2          # minibatch_size
SEQ = 8            # line_length
D_MODEL = 32       # n_letters (transformer d_model)
NHEAD = 4
DHEAD = D_MODEL // NHEAD
FFN = 64           # feedforward_size
NLAYERS = 2
HIDDEN = 50        # transformer2hidden output size
LN_EPS = 1e-5
NEG = -1e9         # additive cross-batch mask value (exp underflows to 0)

# ---------------- packed-slab layout (all row offsets are multiples of 8) ----
OFF_WQKV = 0                         # (32, 96)   fused Wq|Wk|Wv (transposed)
OFF_WO = 32                          # (32, 32)
OFF_W1 = 64                          # (32, 64)
OFF_W2 = 96                          # (64, 32)
OFF_VECS = 160                       # (8, 128) rows: bqkv,bo,g1,be1,b1,b2,g2,be2
ROWS_PER_LAYER = 168

CONST_BASE = NLAYERS * ROWS_PER_LAYER        # 336
OFF_MASK_KV = CONST_BASE                     # (64, 64)  [head mask | head mask]
OFF_NEG = CONST_BASE + 64                    # (16, 64)  additive cross-batch mask
OFF_MSUM = CONST_BASE + 80                   # (64, 64)  same-head summation mask
OFF_SEL = CONST_BASE + 144                   # (2, 16)   batch selector (8 rows alloc)
OFF_HW1 = CONST_BASE + 152                   # (256, 50) head Linear 1 (transposed)
OFF_HW2 = CONST_BASE + 408                   # (50, 1)   head Linear 2 (56 rows alloc)
OFF_HVEC = CONST_BASE + 464                  # (8, 128)  row0: hb1, row1: hb2
SLAB_ROWS = CONST_BASE + 472                 # 808

LAYER_PARAM_NAMES = (
    "wq_t", "bq", "wk_t", "bk", "wv_t", "bv", "wo_t", "bo",
    "g1", "be1", "w1_t", "b1", "w2_t", "b2", "g2", "be2",
)


# ---------------------------- Pallas kernel -----------------------------------
def _layer_norm(y, g, b):
    # one-pass statistics: var = E[y^2] - mu^2
    mu = jnp.mean(y, axis=-1, keepdims=True)
    ms = jnp.mean(y * y, axis=-1, keepdims=True)
    var = ms - mu * mu
    return (y - mu) * lax.rsqrt(var + LN_EPS) * g + b


def _transformer_kernel(x_ref, slab_ref, spread_ref, out_ref, emb_ref):
    """Fused NLAYERS post-norm encoder layers + flatten + MLP head."""
    f32 = jnp.float32
    B, S, D, H = BATCH, SEQ, D_MODEL, NHEAD
    scale = 1.0 / math.sqrt(DHEAD)

    # --- precomputed constants (single packed DMA, static-offset slices) -----
    mask_kv = slab_ref[OFF_MASK_KV:OFF_MASK_KV + H * B * S, 0:2 * D]   # (64, 64)
    neg_mask = slab_ref[OFF_NEG:OFF_NEG + B * S, 0:H * B * S]          # (16, 64)
    mask_sum = slab_ref[OFF_MSUM:OFF_MSUM + H * B * S, 0:H * B * S]    # (64, 64)
    sel = slab_ref[OFF_SEL:OFF_SEL + B, 0:B * S]                       # (2, 16)
    spread = spread_ref[...]                                           # (16, 256)

    x2 = x_ref[...]                                                    # (B*S, D)

    for layer in range(NLAYERS):
        base = layer * ROWS_PER_LAYER
        wqkv = slab_ref[base + OFF_WQKV:base + OFF_WQKV + D, 0:3 * D]  # (32, 96)
        wo = slab_ref[base + OFF_WO:base + OFF_WO + D, 0:D]            # (32, 32)
        w1 = slab_ref[base + OFF_W1:base + OFF_W1 + D, 0:FFN]          # (32, 64)
        w2 = slab_ref[base + OFF_W2:base + OFF_W2 + FFN, 0:D]          # (64, 32)
        vecs = slab_ref[base + OFF_VECS:base + OFF_VECS + 8, :]        # (8, 128)
        bqkv = vecs[0:1, 0:3 * D]
        bo = vecs[1:2, 0:D]
        g1 = vecs[2:3, 0:D]
        be1 = vecs[3:4, 0:D]
        b1 = vecs[4:5, 0:FFN]
        b2 = vecs[5:6, 0:D]
        g2 = vecs[6:7, 0:D]
        be2 = vecs[7:8, 0:D]

        # --- fused QKV projection: one (16,32)x(32,96) MXU op ---
        qkv = jnp.dot(x2, wqkv, preferred_element_type=f32) + bqkv     # (16, 96)
        q = qkv[:, 0:D] * scale                                        # (16, 32)
        kv = qkv[:, D:3 * D]                                           # (16, 64)

        # --- batch x head block-diagonal attention (all heads, all batches) --
        # head-major replication: row r = h*(B*S) + (b*S + j)
        kv_bd = jnp.concatenate([kv] * H, axis=0) * mask_kv            # (64, 64)
        k_bd = kv_bd[:, 0:D]                                           # (64, 32)
        v_bd = kv_bd[:, D:2 * D]                                       # (64, 32)

        # scores[b*S+i, h*B*S + b'*S + j] = <q_h[b,i], k_h[b',j]> (masked b'!=b)
        s = lax.dot_general(q, k_bd, (((1,), (1,)), ((), ())),
                            preferred_element_type=f32)                # (16, 64)
        s = s + neg_mask
        p = jnp.exp(s - jnp.max(s, axis=-1, keepdims=True))
        denom = jnp.dot(p, mask_sum, preferred_element_type=f32)       # per-head sums
        p = p * pl.reciprocal(denom, approx=False)
        attn = jnp.dot(p, v_bd, preferred_element_type=f32)            # (16, 32)
        attn = jnp.dot(attn, wo, preferred_element_type=f32) + bo

        # --- residual + LayerNorm 1 ---
        y = _layer_norm(x2 + attn, g1, be1)

        # --- feed-forward (dropout = identity / eval mode) ---
        h1 = jnp.maximum(jnp.dot(y, w1, preferred_element_type=f32) + b1, 0.0)
        ff = jnp.dot(h1, w2, preferred_element_type=f32) + b2

        # --- residual + LayerNorm 2 ---
        x2 = _layer_norm(y + ff, g2, be2)

    # --- flatten (B, S, D) -> (B, S*D) via spread + select matmul ------------
    x_spread = jnp.concatenate([x2] * S, axis=1) * spread              # (16, 256)
    emb = jnp.dot(sel, x_spread, preferred_element_type=f32)           # (2, 256)
    emb_ref[...] = emb

    # --- MLP head: Linear(S*D, 50) -> ReLU -> Linear(50, 1) ---
    hw1 = slab_ref[OFF_HW1:OFF_HW1 + S * D, 0:HIDDEN]                  # (256, 50)
    hw2 = slab_ref[OFF_HW2:OFF_HW2 + HIDDEN, 0:1]                      # (50, 1)
    hvec = slab_ref[OFF_HVEC:OFF_HVEC + 8, :]                          # (8, 128)
    hb1 = hvec[0:1, 0:HIDDEN]
    hb2 = hvec[1:2, 0:1]
    h = jnp.maximum(jnp.dot(emb, hw1, preferred_element_type=f32) + hb1, 0.0)
    out_ref[...] = jnp.dot(h, hw2, preferred_element_type=f32) + hb2


# ---------------------------- wrapper ------------------------------------------
@jax.jit
def transformer_forward(x, slab, spread):
    """Returns (output, embedding) exactly like the PyTorch module."""
    B, S, D = x.shape
    x2 = x.reshape(B * S, D)                      # free (leading-dims) reshape
    out, emb = pl.pallas_call(
        _transformer_kernel,
        out_shape=(jax.ShapeDtypeStruct((B, 1), jnp.float32),
                   jax.ShapeDtypeStruct((B, S * D), jnp.float32)),
        in_specs=[pl.BlockSpec(memory_space=pltpu.MemorySpace.VMEM)] * 3,
        out_specs=(pl.BlockSpec(memory_space=pltpu.MemorySpace.VMEM),
                   pl.BlockSpec(memory_space=pltpu.MemorySpace.VMEM)),
    )(x2, slab, spread)
    return out, emb


# ---------------------------- parameter packing --------------------------------
def pack_params(params):
    """Pack all weights/biases + constant masks into one (SLAB_ROWS,128) slab
    plus the (16,256) flatten spread mask.  Built once at init time."""
    slab = np.zeros((SLAB_ROWS, 128), np.float32)

    for li, lp in enumerate(params["layers"]):
        base = li * ROWS_PER_LAYER
        wqkv = np.concatenate([np.asarray(lp["wq_t"]), np.asarray(lp["wk_t"]),
                               np.asarray(lp["wv_t"])], axis=1)        # (32, 96)
        slab[base + OFF_WQKV:base + OFF_WQKV + D_MODEL, :3 * D_MODEL] = wqkv
        slab[base + OFF_WO:base + OFF_WO + D_MODEL, :D_MODEL] = np.asarray(lp["wo_t"])
        slab[base + OFF_W1:base + OFF_W1 + D_MODEL, :FFN] = np.asarray(lp["w1_t"])
        slab[base + OFF_W2:base + OFF_W2 + FFN, :D_MODEL] = np.asarray(lp["w2_t"])
        v = base + OFF_VECS
        bqkv = np.concatenate([np.asarray(lp["bq"]), np.asarray(lp["bk"]),
                               np.asarray(lp["bv"])], axis=1)[0]       # (96,)
        slab[v + 0, :3 * D_MODEL] = bqkv
        slab[v + 1, :D_MODEL] = np.asarray(lp["bo"])[0]
        slab[v + 2, :D_MODEL] = np.asarray(lp["g1"])[0]
        slab[v + 3, :D_MODEL] = np.asarray(lp["be1"])[0]
        slab[v + 4, :FFN] = np.asarray(lp["b1"])[0]
        slab[v + 5, :D_MODEL] = np.asarray(lp["b2"])[0]
        slab[v + 6, :D_MODEL] = np.asarray(lp["g2"])[0]
        slab[v + 7, :D_MODEL] = np.asarray(lp["be2"])[0]

    # --- constant masks (head-major block-diagonal attention + flatten) ------
    HBS = NHEAD * BATCH * SEQ
    BS = BATCH * SEQ
    r = np.arange(HBS)
    d = np.arange(D_MODEL)
    mk = (d[None, :] // DHEAD == r[:, None] // BS).astype(np.float32)  # (64, 32)
    slab[OFF_MASK_KV:OFF_MASK_KV + HBS, :2 * D_MODEL] = np.concatenate([mk, mk], 1)

    rows = np.arange(BS)
    cols = np.arange(HBS)
    valid = (rows[:, None] // SEQ) == ((cols[None, :] % BS) // SEQ)
    slab[OFF_NEG:OFF_NEG + BS, :HBS] = np.where(valid, 0.0, NEG).astype(np.float32)

    msum = (cols[:, None] // BS == cols[None, :] // BS).astype(np.float32)
    slab[OFF_MSUM:OFF_MSUM + HBS, :HBS] = msum

    selm = (rows[None, :] // SEQ == np.arange(BATCH)[:, None]).astype(np.float32)
    slab[OFF_SEL:OFF_SEL + BATCH, :BS] = selm

    hp = params["head"]
    slab[OFF_HW1:OFF_HW1 + SEQ * D_MODEL, :HIDDEN] = np.asarray(hp["w1_t"])
    slab[OFF_HW2:OFF_HW2 + HIDDEN, :1] = np.asarray(hp["w2_t"])
    slab[OFF_HVEC + 0, :HIDDEN] = np.asarray(hp["b1"])[0]
    slab[OFF_HVEC + 1, :1] = np.asarray(hp["b2"])[0]

    cc = np.arange(SEQ * D_MODEL)
    spread = ((cc[None, :] // D_MODEL) == (rows[:, None] % SEQ)).astype(np.float32)
    return jnp.asarray(slab), jnp.asarray(spread)


# ---------------------------- parameters ---------------------------------------
def init_params(key):
    s = 0.05
    layers = []
    for _ in range(NLAYERS):
        key, *ks = jax.random.split(key, 13)
        layers.append(dict(
            wq_t=jax.random.normal(ks[0], (D_MODEL, D_MODEL), jnp.float32) * s,
            bq=jax.random.normal(ks[1], (1, D_MODEL), jnp.float32) * s,
            wk_t=jax.random.normal(ks[2], (D_MODEL, D_MODEL), jnp.float32) * s,
            bk=jax.random.normal(ks[3], (1, D_MODEL), jnp.float32) * s,
            wv_t=jax.random.normal(ks[4], (D_MODEL, D_MODEL), jnp.float32) * s,
            bv=jax.random.normal(ks[5], (1, D_MODEL), jnp.float32) * s,
            wo_t=jax.random.normal(ks[6], (D_MODEL, D_MODEL), jnp.float32) * s,
            bo=jax.random.normal(ks[7], (1, D_MODEL), jnp.float32) * s,
            g1=jnp.ones((1, D_MODEL), jnp.float32),
            be1=jnp.zeros((1, D_MODEL), jnp.float32),
            w1_t=jax.random.normal(ks[8], (D_MODEL, FFN), jnp.float32) * s,
            b1=jax.random.normal(ks[9], (1, FFN), jnp.float32) * s,
            w2_t=jax.random.normal(ks[10], (FFN, D_MODEL), jnp.float32) * s,
            b2=jax.random.normal(ks[11], (1, D_MODEL), jnp.float32) * s,
            g2=jnp.ones((1, D_MODEL), jnp.float32),
            be2=jnp.zeros((1, D_MODEL), jnp.float32),
        ))
    key, k1, k2, k3, k4 = jax.random.split(key, 5)
    head_p = dict(
        w1_t=jax.random.normal(k1, (SEQ * D_MODEL, HIDDEN), jnp.float32) * s,
        b1=jax.random.normal(k2, (1, HIDDEN), jnp.float32) * s,
        w2_t=jax.random.normal(k3, (HIDDEN, 1), jnp.float32) * s,
        b2=jax.random.normal(k4, (1, 1), jnp.float32) * s,
    )
    return dict(layers=layers, head=head_p)


# ---------------------------- pure-JAX reference -------------------------------
def reference_forward(x, params):
    def ln(y, g, b):
        mu = y.mean(-1, keepdims=True)
        var = ((y - mu) ** 2).mean(-1, keepdims=True)
        return (y - mu) / jnp.sqrt(var + LN_EPS) * g + b

    B, S, D = x.shape
    Dh = D // NHEAD
    h = x
    for lp in params["layers"]:
        q = h @ lp["wq_t"] + lp["bq"]
        k = h @ lp["wk_t"] + lp["bk"]
        v = h @ lp["wv_t"] + lp["bv"]
        q = q.reshape(B, S, NHEAD, Dh).transpose(0, 2, 1, 3)
        k = k.reshape(B, S, NHEAD, Dh).transpose(0, 2, 1, 3)
        v = v.reshape(B, S, NHEAD, Dh).transpose(0, 2, 1, 3)
        sc = jnp.einsum("bhqd,bhkd->bhqk", q, k) / math.sqrt(Dh)
        p = jax.nn.softmax(sc, axis=-1)
        a = jnp.einsum("bhqk,bhkd->bhqd", p, v).transpose(0, 2, 1, 3).reshape(B, S, D)
        a = a @ lp["wo_t"] + lp["bo"]
        h = ln(h + a, lp["g1"], lp["be1"])
        ff = jnp.maximum(h @ lp["w1_t"] + lp["b1"], 0.0) @ lp["w2_t"] + lp["b2"]
        h = ln(h + ff, lp["g2"], lp["be2"])
    emb = h.reshape(B, S * D)
    hh = jnp.maximum(emb @ params["head"]["w1_t"] + params["head"]["b1"], 0.0)
    out = hh @ params["head"]["w2_t"] + params["head"]["b2"]
    return out, emb


# ---------------------------- main ---------------------------------------------
if __name__ == "__main__":
    key = jax.random.PRNGKey(0)
    key, kx, kp = jax.random.split(key, 3)
    x = jax.random.normal(kx, (BATCH, SEQ, D_MODEL), jnp.float32)
    params = init_params(kp)
    slab, spread = pack_params(params)          # packed once at init time

    out, emb = transformer_forward(x, slab, spread)
    out = jax.block_until_ready(out)
    emb = jax.block_until_ready(emb)

    ref_out, ref_emb = reference_forward(x, params)
    assert out.shape == (BATCH, 1) and emb.shape == (BATCH, SEQ * D_MODEL)
    assert jnp.allclose(out, ref_out, rtol=1e-3, atol=2e-4), "output mismatch"
    assert jnp.allclose(emb, ref_emb, rtol=1e-3, atol=2e-4), "embedding mismatch"

    print("KERNEL_OK")
</pallas_src>

<mosaic_0001>
module attributes {stable_mosaic.version = 11 : i64} {
  func.func @_transformer_kernel(%arg0: memref<16x32xf32, #tpu.memory_space<vmem>>, %arg1: memref<808x128xf32, #tpu.memory_space<vmem>>, %arg2: memref<16x256xf32, #tpu.memory_space<vmem>>, %arg3: memref<2x1xf32, #tpu.memory_space<vmem>>, %arg4: memref<2x256xf32, #tpu.memory_space<vmem>>) attributes {dimension_semantics = [], scalar_prefetch = 0 : i64, scratch_operands = 0 : i64, tpu.core_type = #tpu.core_type<tc>} {
    %c336 = arith.constant 336 : index
    %c0 = arith.constant 0 : index
    %0 = vector.load %arg1[%c336, %c0] : memref<808x128xf32, #tpu.memory_space<vmem>>, vector<64x64xf32>
    %c400 = arith.constant 400 : index
    %c0_0 = arith.constant 0 : index
    %1 = vector.load %arg1[%c400, %c0_0] : memref<808x128xf32, #tpu.memory_space<vmem>>, vector<16x64xf32>
    %c416 = arith.constant 416 : index
    %c0_1 = arith.constant 0 : index
    %2 = vector.load %arg1[%c416, %c0_1] : memref<808x128xf32, #tpu.memory_space<vmem>>, vector<64x64xf32>
    %c480 = arith.constant 480 : index
    %c0_2 = arith.constant 0 : index
    %3 = vector.load %arg1[%c480, %c0_2] : memref<808x128xf32, #tpu.memory_space<vmem>>, vector<2x16xf32>
    %c0_3 = arith.constant 0 : index
    %c0_4 = arith.constant 0 : index
    %4 = vector.load %arg2[%c0_3, %c0_4] : memref<16x256xf32, #tpu.memory_space<vmem>>, vector<16x256xf32>
    %c0_5 = arith.constant 0 : index
    %c0_6 = arith.constant 0 : index
    %5 = vector.load %arg0[%c0_5, %c0_6] : memref<16x32xf32, #tpu.memory_space<vmem>>, vector<16x32xf32>
    %c0_7 = arith.constant 0 : index
    %c0_8 = arith.constant 0 : index
    %6 = vector.load %arg1[%c0_7, %c0_8] : memref<808x128xf32, #tpu.memory_space<vmem>>, vector<32x96xf32>
    %c32 = arith.constant 32 : index
    %c0_9 = arith.constant 0 : index
    %7 = vector.load %arg1[%c32, %c0_9] : memref<808x128xf32, #tpu.memory_space<vmem>>, vector<32x32xf32>
    %c64 = arith.constant 64 : index
    %c0_10 = arith.constant 0 : index
    %8 = vector.load %arg1[%c64, %c0_10] : memref<808x128xf32, #tpu.memory_space<vmem>>, vector<32x64xf32>
    %c96 = arith.constant 96 : index
    %c0_11 = arith.constant 0 : index
    %9 = vector.load %arg1[%c96, %c0_11] : memref<808x128xf32, #tpu.memory_space<vmem>>, vector<64x32xf32>
    %c160 = arith.constant 160 : index
    %c0_12 = arith.constant 0 : index
    %10 = vector.load %arg1[%c160, %c0_12] : memref<808x128xf32, #tpu.memory_space<vmem>>, vector<8x128xf32>
    %11 = vector.extract_strided_slice %10 {offsets = [0, 0], sizes = [1, 96], strides = [1, 1]} : vector<8x128xf32> to vector<1x96xf32>
    %12 = vector.extract_strided_slice %10 {offsets = [1, 0], sizes = [1, 32], strides = [1, 1]} : vector<8x128xf32> to vector<1x32xf32>
    %13 = vector.extract_strided_slice %10 {offsets = [2, 0], sizes = [1, 32], strides = [1, 1]} : vector<8x128xf32> to vector<1x32xf32>
    %14 = vector.extract_strided_slice %10 {offsets = [3, 0], sizes = [1, 32], strides = [1, 1]} : vector<8x128xf32> to vector<1x32xf32>
    %15 = vector.extract_strided_slice %10 {offsets = [4, 0], sizes = [1, 64], strides = [1, 1]} : vector<8x128xf32> to vector<1x64xf32>
    %16 = vector.extract_strided_slice %10 {offsets = [5, 0], sizes = [1, 32], strides = [1, 1]} : vector<8x128xf32> to vector<1x32xf32>
    %17 = vector.extract_strided_slice %10 {offsets = [6, 0], sizes = [1, 32], strides = [1, 1]} : vector<8x128xf32> to vector<1x32xf32>
    %18 = vector.extract_strided_slice %10 {offsets = [7, 0], sizes = [1, 32], strides = [1, 1]} : vector<8x128xf32> to vector<1x32xf32>
    %cst = arith.constant dense<0.000000e+00> : vector<16x96xf32>
    %19 = tpu.matmul %5, %6, %cst {dimension_numbers = #tpu.dot_dimension_numbers<[1], [0], [0], [1], [0, 0, 1, 1], [], []>} : vector<16x32xf32>, vector<32x96xf32>, vector<16x96xf32> -> vector<16x96xf32>
    %20 = vector.broadcast %11 : vector<1x96xf32> to vector<16x96xf32>
    %21 = arith.addf %19, %20 : vector<16x96xf32>
    %22 = vector.extract_strided_slice %21 {offsets = [0, 0], sizes = [16, 32], strides = [1, 1]} : vector<16x96xf32> to vector<16x32xf32>
    %cst_13 = arith.constant 0.353553385 : f32
    %23 = vector.broadcast %cst_13 : f32 to vector<16x32xf32>
    %24 = arith.mulf %22, %23 : vector<16x32xf32>
    %25 = vector.extract_strided_slice %21 {offsets = [0, 32], sizes = [16, 64], strides = [1, 1]} : vector<16x96xf32> to vector<16x64xf32>
    %26 = tpu.concatenate %25, %25, %25, %25 in 0 : vector<16x64xf32>, vector<16x64xf32>, vector<16x64xf32>, vector<16x64xf32> -> vector<64x64xf32>
    %27 = arith.mulf %26, %0 : vector<64x64xf32>
    %28 = vector.extract_strided_slice %27 {offsets = [0, 0], sizes = [64, 32], strides = [1, 1]} : vector<64x64xf32> to vector<64x32xf32>
    %29 = vector.extract_strided_slice %27 {offsets = [0, 32], sizes = [64, 32], strides = [1, 1]} : vector<64x64xf32> to vector<64x32xf32>
    %cst_14 = arith.constant dense<0.000000e+00> : vector<16x64xf32>
    %30 = tpu.matmul %24, %28, %cst_14 {dimension_numbers = #tpu.dot_dimension_numbers<[1], [1], [0], [0], [0, 0, 1, 0], [], []>} : vector<16x32xf32>, vector<64x32xf32>, vector<16x64xf32> -> vector<16x64xf32>
    %31 = arith.addf %30, %1 : vector<16x64xf32>
    %cst_15 = arith.constant dense<0xFF800000> : vector<16xf32>
    %32 = vector.multi_reduction <maximumf>, %31, %cst_15 [1] : vector<16x64xf32> to vector<16xf32>
    %33 = vector.shape_cast %32 : vector<16xf32> to vector<16x1xf32>
    %34 = vector.broadcast %33 : vector<16x1xf32> to vector<16x64xf32>
    %35 = arith.subf %31, %34 : vector<16x64xf32>
    %36 = math.exp %35 : vector<16x64xf32>
    %cst_16 = arith.constant dense<0.000000e+00> : vector<16x64xf32>
    %37 = tpu.matmul %36, %2, %cst_16 {dimension_numbers = #tpu.dot_dimension_numbers<[1], [0], [0], [1], [0, 0, 1, 1], [], []>} : vector<16x64xf32>, vector<64x64xf32>, vector<16x64xf32> -> vector<16x64xf32>
    %38 = tpu.reciprocal %37 : vector<16x64xf32> -> vector<16x64xf32>
    %39 = arith.mulf %36, %38 : vector<16x64xf32>
    %cst_17 = arith.constant dense<0.000000e+00> : vector<16x32xf32>
    %40 = tpu.matmul %39, %29, %cst_17 {dimension_numbers = #tpu.dot_dimension_numbers<[1], [0], [0], [1], [0, 0, 1, 1], [], []>} : vector<16x64xf32>, vector<64x32xf32>, vector<16x32xf32> -> vector<16x32xf32>
    %cst_18 = arith.constant dense<0.000000e+00> : vector<16x32xf32>
    %41 = tpu.matmul %40, %7, %cst_18 {dimension_numbers = #tpu.dot_dimension_numbers<[1], [0], [0], [1], [0, 0, 1, 1], [], []>} : vector<16x32xf32>, vector<32x32xf32>, vector<16x32xf32> -> vector<16x32xf32>
    %42 = vector.broadcast %12 : vector<1x32xf32> to vector<16x32xf32>
    %43 = arith.addf %41, %42 : vector<16x32xf32>
    %44 = arith.addf %5, %43 : vector<16x32xf32>
    %cst_19 = arith.constant dense<0.000000e+00> : vector<16xf32>
    %45 = vector.multi_reduction <add>, %44, %cst_19 [1] : vector<16x32xf32> to vector<16xf32>
    %46 = vector.shape_cast %45 : vector<16xf32> to vector<16x1xf32>
    %cst_20 = arith.constant 3.200000e+01 : f32
    %47 = vector.broadcast %cst_20 : f32 to vector<16x1xf32>
    %48 = arith.divf %46, %47 : vector<16x1xf32>
    %49 = arith.mulf %44, %44 : vector<16x32xf32>
    %cst_21 = arith.constant dense<0.000000e+00> : vector<16xf32>
    %50 = vector.multi_reduction <add>, %49, %cst_21 [1] : vector<16x32xf32> to vector<16xf32>
    %51 = vector.shape_cast %50 : vector<16xf32> to vector<16x1xf32>
    %cst_22 = arith.constant 3.200000e+01 : f32
    %52 = vector.broadcast %cst_22 : f32 to vector<16x1xf32>
    %53 = arith.divf %51, %52 : vector<16x1xf32>
    %54 = arith.mulf %48, %48 : vector<16x1xf32>
    %55 = arith.subf %53, %54 : vector<16x1xf32>
    %56 = vector.broadcast %48 : vector<16x1xf32> to vector<16x32xf32>
    %57 = arith.subf %44, %56 : vector<16x32xf32>
    %cst_23 = arith.constant 9.99999974E-6 : f32
    %58 = vector.broadcast %cst_23 : f32 to vector<16x1xf32>
    %59 = arith.addf %55, %58 : vector<16x1xf32>
    %60 = math.rsqrt %59 : vector<16x1xf32>
    %61 = vector.broadcast %60 : vector<16x1xf32> to vector<16x32xf32>
    %62 = arith.mulf %57, %61 : vector<16x32xf32>
    %63 = vector.broadcast %13 : vector<1x32xf32> to vector<16x32xf32>
    %64 = arith.mulf %62, %63 : vector<16x32xf32>
    %65 = vector.broadcast %14 : vector<1x32xf32> to vector<16x32xf32>
    %66 = arith.addf %64, %65 : vector<16x32xf32>
    %cst_24 = arith.constant dense<0.000000e+00> : vector<16x64xf32>
    %67 = tpu.matmul %66, %8, %cst_24 {dimension_numbers = #tpu.dot_dimension_numbers<[1], [0], [0], [1], [0, 0, 1, 1], [], []>} : vector<16x32xf32>, vector<32x64xf32>, vector<16x64xf32> -> vector<16x64xf32>
    %68 = vector.broadcast %15 : vector<1x64xf32> to vector<16x64xf32>
    %69 = arith.addf %67, %68 : vector<16x64xf32>
    %cst_25 = arith.constant 0.000000e+00 : f32
    %70 = vector.broadcast %cst_25 : f32 to vector<16x64xf32>
    %71 = arith.maximumf %69, %70 : vector<16x64xf32>
    %cst_26 = arith.constant dense<0.000000e+00> : vector<16x32xf32>
    %72 = tpu.matmul %71, %9, %cst_26 {dimension_numbers = #tpu.dot_dimension_numbers<[1], [0], [0], [1], [0, 0, 1, 1], [], []>} : vector<16x64xf32>, vector<64x32xf32>, vector<16x32xf32> -> vector<16x32xf32>
    %73 = vector.broadcast %16 : vector<1x32xf32> to vector<16x32xf32>
    %74 = arith.addf %72, %73 : vector<16x32xf32>
    %75 = arith.addf %66, %74 : vector<16x32xf32>
    %cst_27 = arith.constant dense<0.000000e+00> : vector<16xf32>
    %76 = vector.multi_reduction <add>, %75, %cst_27 [1] : vector<16x32xf32> to vector<16xf32>
    %77 = vector.shape_cast %76 : vector<16xf32> to vector<16x1xf32>
    %cst_28 = arith.constant 3.200000e+01 : f32
    %78 = vector.broadcast %cst_28 : f32 to vector<16x1xf32>
    %79 = arith.divf %77, %78 : vector<16x1xf32>
    %80 = arith.mulf %75, %75 : vector<16x32xf32>
    %cst_29 = arith.constant dense<0.000000e+00> : vector<16xf32>
    %81 = vector.multi_reduction <add>, %80, %cst_29 [1] : vector<16x32xf32> to vector<16xf32>
    %82 = vector.shape_cast %81 : vector<16xf32> to vector<16x1xf32>
    %cst_30 = arith.constant 3.200000e+01 : f32
    %83 = vector.broadcast %cst_30 : f32 to vector<16x1xf32>
    %84 = arith.divf %82, %83 : vector<16x1xf32>
    %85 = arith.mulf %79, %79 : vector<16x1xf32>
    %86 = arith.subf %84, %85 : vector<16x1xf32>
    %87 = vector.broadcast %79 : vector<16x1xf32> to vector<16x32xf32>
    %88 = arith.subf %75, %87 : vector<16x32xf32>
    %cst_31 = arith.constant 9.99999974E-6 : f32
    %89 = vector.broadcast %cst_31 : f32 to vector<16x1xf32>
    %90 = arith.addf %86, %89 : vector<16x1xf32>
    %91 = math.rsqrt %90 : vector<16x1xf32>
    %92 = vector.broadcast %91 : vector<16x1xf32> to vector<16x32xf32>
    %93 = arith.mulf %88, %92 : vector<16x32xf32>
    %94 = vector.broadcast %17 : vector<1x32xf32> to vector<16x32xf32>
    %95 = arith.mulf %93, %94 : vector<16x32xf32>
    %96 = vector.broadcast %18 : vector<1x32xf32> to vector<16x32xf32>
    %97 = arith.addf %95, %96 : vector<16x32xf32>
    %c168 = arith.constant 168 : index
    %c0_32 = arith.constant 0 : index
    %98 = vector.load %arg1[%c168, %c0_32] : memref<808x128xf32, #tpu.memory_space<vmem>>, vector<32x96xf32>
    %c200 = arith.constant 200 : index
    %c0_33 = arith.constant 0 : index
    %99 = vector.load %arg1[%c200, %c0_33] : memref<808x128xf32, #tpu.memory_space<vmem>>, vector<32x32xf32>
    %c232 = arith.constant 232 : index
    %c0_34 = arith.constant 0 : index
    %100 = vector.load %arg1[%c232, %c0_34] : memref<808x128xf32, #tpu.memory_space<vmem>>, vector<32x64xf32>
    %c264 = arith.constant 264 : index
    %c0_35 = arith.constant 0 : index
    %101 = vector.load %arg1[%c264, %c0_35] : memref<808x128xf32, #tpu.memory_space<vmem>>, vector<64x32xf32>
    %c328 = arith.constant 328 : index
    %c0_36 = arith.constant 0 : index
    %102 = vector.load %arg1[%c328, %c0_36] : memref<808x128xf32, #tpu.memory_space<vmem>>, vector<8x128xf32>
    %103 = vector.extract_strided_slice %102 {offsets = [0, 0], sizes = [1, 96], strides = [1, 1]} : vector<8x128xf32> to vector<1x96xf32>
    %104 = vector.extract_strided_slice %102 {offsets = [1, 0], sizes = [1, 32], strides = [1, 1]} : vector<8x128xf32> to vector<1x32xf32>
    %105 = vector.extract_strided_slice %102 {offsets = [2, 0], sizes = [1, 32], strides = [1, 1]} : vector<8x128xf32> to vector<1x32xf32>
    %106 = vector.extract_strided_slice %102 {offsets = [3, 0], sizes = [1, 32], strides = [1, 1]} : vector<8x128xf32> to vector<1x32xf32>
    %107 = vector.extract_strided_slice %102 {offsets = [4, 0], sizes = [1, 64], strides = [1, 1]} : vector<8x128xf32> to vector<1x64xf32>
    %108 = vector.extract_strided_slice %102 {offsets = [5, 0], sizes = [1, 32], strides = [1, 1]} : vector<8x128xf32> to vector<1x32xf32>
    %109 = vector.extract_strided_slice %102 {offsets = [6, 0], sizes = [1, 32], strides = [1, 1]} : vector<8x128xf32> to vector<1x32xf32>
    %110 = vector.extract_strided_slice %102 {offsets = [7, 0], sizes = [1, 32], strides = [1, 1]} : vector<8x128xf32> to vector<1x32xf32>
    %cst_37 = arith.constant dense<0.000000e+00> : vector<16x96xf32>
    %111 = tpu.matmul %97, %98, %cst_37 {dimension_numbers = #tpu.dot_dimension_numbers<[1], [0], [0], [1], [0, 0, 1, 1], [], []>} : vector<16x32xf32>, vector<32x96xf32>, vector<16x96xf32> -> vector<16x96xf32>
    %112 = vector.broadcast %103 : vector<1x96xf32> to vector<16x96xf32>
    %113 = arith.addf %111, %112 : vector<16x96xf32>
    %114 = vector.extract_strided_slice %113 {offsets = [0, 0], sizes = [16, 32], strides = [1, 1]} : vector<16x96xf32> to vector<16x32xf32>
    %cst_38 = arith.constant 0.353553385 : f32
    %115 = vector.broadcast %cst_38 : f32 to vector<16x32xf32>
    %116 = arith.mulf %114, %115 : vector<16x32xf32>
    %117 = vector.extract_strided_slice %113 {offsets = [0, 32], sizes = [16, 64], strides = [1, 1]} : vector<16x96xf32> to vector<16x64xf32>
    %118 = tpu.concatenate %117, %117, %117, %117 in 0 : vector<16x64xf32>, vector<16x64xf32>, vector<16x64xf32>, vector<16x64xf32> -> vector<64x64xf32>
    %119 = arith.mulf %118, %0 : vector<64x64xf32>
    %120 = vector.extract_strided_slice %119 {offsets = [0, 0], sizes = [64, 32], strides = [1, 1]} : vector<64x64xf32> to vector<64x32xf32>
    %121 = vector.extract_strided_slice %119 {offsets = [0, 32], sizes = [64, 32], strides = [1, 1]} : vector<64x64xf32> to vector<64x32xf32>
    %cst_39 = arith.constant dense<0.000000e+00> : vector<16x64xf32>
    %122 = tpu.matmul %116, %120, %cst_39 {dimension_numbers = #tpu.dot_dimension_numbers<[1], [1], [0], [0], [0, 0, 1, 0], [], []>} : vector<16x32xf32>, vector<64x32xf32>, vector<16x64xf32> -> vector<16x64xf32>
    %123 = arith.addf %122, %1 : vector<16x64xf32>
    %cst_40 = arith.constant dense<0xFF800000> : vector<16xf32>
    %124 = vector.multi_reduction <maximumf>, %123, %cst_40 [1] : vector<16x64xf32> to vector<16xf32>
    %125 = vector.shape_cast %124 : vector<16xf32> to vector<16x1xf32>
    %126 = vector.broadcast %125 : vector<16x1xf32> to vector<16x64xf32>
    %127 = arith.subf %123, %126 : vector<16x64xf32>
    %128 = math.exp %127 : vector<16x64xf32>
    %cst_41 = arith.constant dense<0.000000e+00> : vector<16x64xf32>
    %129 = tpu.matmul %128, %2, %cst_41 {dimension_numbers = #tpu.dot_dimension_numbers<[1], [0], [0], [1], [0, 0, 1, 1], [], []>} : vector<16x64xf32>, vector<64x64xf32>, vector<16x64xf32> -> vector<16x64xf32>
    %130 = tpu.reciprocal %129 : vector<16x64xf32> -> vector<16x64xf32>
    %131 = arith.mulf %128, %130 : vector<16x64xf32>
    %cst_42 = arith.constant dense<0.000000e+00> : vector<16x32xf32>
    %132 = tpu.matmul %131, %121, %cst_42 {dimension_numbers = #tpu.dot_dimension_numbers<[1], [0], [0], [1], [0, 0, 1, 1], [], []>} : vector<16x64xf32>, vector<64x32xf32>, vector<16x32xf32> -> vector<16x32xf32>
    %cst_43 = arith.constant dense<0.000000e+00> : vector<16x32xf32>
    %133 = tpu.matmul %132, %99, %cst_43 {dimension_numbers = #tpu.dot_dimension_numbers<[1], [0], [0], [1], [0, 0, 1, 1], [], []>} : vector<16x32xf32>, vector<32x32xf32>, vector<16x32xf32> -> vector<16x32xf32>
    %134 = vector.broadcast %104 : vector<1x32xf32> to vector<16x32xf32>
    %135 = arith.addf %133, %134 : vector<16x32xf32>
    %136 = arith.addf %97, %135 : vector<16x32xf32>
    %cst_44 = arith.constant dense<0.000000e+00> : vector<16xf32>
    %137 = vector.multi_reduction <add>, %136, %cst_44 [1] : vector<16x32xf32> to vector<16xf32>
    %138 = vector.shape_cast %137 : vector<16xf32> to vector<16x1xf32>
    %cst_45 = arith.constant 3.200000e+01 : f32
    %139 = vector.broadcast %cst_45 : f32 to vector<16x1xf32>
    %140 = arith.divf %138, %139 : vector<16x1xf32>
    %141 = arith.mulf %136, %136 : vector<16x32xf32>
    %cst_46 = arith.constant dense<0.000000e+00> : vector<16xf32>
    %142 = vector.multi_reduction <add>, %141, %cst_46 [1] : vector<16x32xf32> to vector<16xf32>
    %143 = vector.shape_cast %142 : vector<16xf32> to vector<16x1xf32>
    %cst_47 = arith.constant 3.200000e+01 : f32
    %144 = vector.broadcast %cst_47 : f32 to vector<16x1xf32>
    %145 = arith.divf %143, %144 : vector<16x1xf32>
    %146 = arith.mulf %140, %140 : vector<16x1xf32>
    %147 = arith.subf %145, %146 : vector<16x1xf32>
    %148 = vector.broadcast %140 : vector<16x1xf32> to vector<16x32xf32>
    %149 = arith.subf %136, %148 : vector<16x32xf32>
    %cst_48 = arith.constant 9.99999974E-6 : f32
    %150 = vector.broadcast %cst_48 : f32 to vector<16x1xf32>
    %151 = arith.addf %147, %150 : vector<16x1xf32>
    %152 = math.rsqrt %151 : vector<16x1xf32>
    %153 = vector.broadcast %152 : vector<16x1xf32> to vector<16x32xf32>
    %154 = arith.mulf %149, %153 : vector<16x32xf32>
    %155 = vector.broadcast %105 : vector<1x32xf32> to vector<16x32xf32>
    %156 = arith.mulf %154, %155 : vector<16x32xf32>
    %157 = vector.broadcast %106 : vector<1x32xf32> to vector<16x32xf32>
    %158 = arith.addf %156, %157 : vector<16x32xf32>
    %cst_49 = arith.constant dense<0.000000e+00> : vector<16x64xf32>
    %159 = tpu.matmul %158, %100, %cst_49 {dimension_numbers = #tpu.dot_dimension_numbers<[1], [0], [0], [1], [0, 0, 1, 1], [], []>} : vector<16x32xf32>, vector<32x64xf32>, vector<16x64xf32> -> vector<16x64xf32>
    %160 = vector.broadcast %107 : vector<1x64xf32> to vector<16x64xf32>
    %161 = arith.addf %159, %160 : vector<16x64xf32>
    %cst_50 = arith.constant 0.000000e+00 : f32
    %162 = vector.broadcast %cst_50 : f32 to vector<16x64xf32>
    %163 = arith.maximumf %161, %162 : vector<16x64xf32>
    %cst_51 = arith.constant dense<0.000000e+00> : vector<16x32xf32>
    %164 = tpu.matmul %163, %101, %cst_51 {dimension_numbers = #tpu.dot_dimension_numbers<[1], [0], [0], [1], [0, 0, 1, 1], [], []>} : vector<16x64xf32>, vector<64x32xf32>, vector<16x32xf32> -> vector<16x32xf32>
    %165 = vector.broadcast %108 : vector<1x32xf32> to vector<16x32xf32>
    %166 = arith.addf %164, %165 : vector<16x32xf32>
    %167 = arith.addf %158, %166 : vector<16x32xf32>
    %cst_52 = arith.constant dense<0.000000e+00> : vector<16xf32>
    %168 = vector.multi_reduction <add>, %167, %cst_52 [1] : vector<16x32xf32> to vector<16xf32>
    %169 = vector.shape_cast %168 : vector<16xf32> to vector<16x1xf32>
    %cst_53 = arith.constant 3.200000e+01 : f32
    %170 = vector.broadcast %cst_53 : f32 to vector<16x1xf32>
    %171 = arith.divf %169, %170 : vector<16x1xf32>
    %172 = arith.mulf %167, %167 : vector<16x32xf32>
    %cst_54 = arith.constant dense<0.000000e+00> : vector<16xf32>
    %173 = vector.multi_reduction <add>, %172, %cst_54 [1] : vector<16x32xf32> to vector<16xf32>
    %174 = vector.shape_cast %173 : vector<16xf32> to vector<16x1xf32>
    %cst_55 = arith.constant 3.200000e+01 : f32
    %175 = vector.broadcast %cst_55 : f32 to vector<16x1xf32>
    %176 = arith.divf %174, %175 : vector<16x1xf32>
    %177 = arith.mulf %171, %171 : vector<16x1xf32>
    %178 = arith.subf %176, %177 : vector<16x1xf32>
    %179 = vector.broadcast %171 : vector<16x1xf32> to vector<16x32xf32>
    %180 = arith.subf %167, %179 : vector<16x32xf32>
    %cst_56 = arith.constant 9.99999974E-6 : f32
    %181 = vector.broadcast %cst_56 : f32 to vector<16x1xf32>
    %182 = arith.addf %178, %181 : vector<16x1xf32>
    %183 = math.rsqrt %182 : vector<16x1xf32>
    %184 = vector.broadcast %183 : vector<16x1xf32> to vector<16x32xf32>
    %185 = arith.mulf %180, %184 : vector<16x32xf32>
    %186 = vector.broadcast %109 : vector<1x32xf32> to vector<16x32xf32>
    %187 = arith.mulf %185, %186 : vector<16x32xf32>
    %188 = vector.broadcast %110 : vector<1x32xf32> to vector<16x32xf32>
    %189 = arith.addf %187, %188 : vector<16x32xf32>
    %190 = tpu.concatenate %189, %189, %189, %189, %189, %189, %189, %189 in 1 : vector<16x32xf32>, vector<16x32xf32>, vector<16x32xf32>, vector<16x32xf32>, vector<16x32xf32>, vector<16x32xf32>, vector<16x32xf32>, vector<16x32xf32> -> vector<16x256xf32>
    %191 = arith.mulf %190, %4 : vector<16x256xf32>
    %cst_57 = arith.constant dense<0.000000e+00> : vector<2x256xf32>
    %192 = tpu.matmul %3, %191, %cst_57 {dimension_numbers = #tpu.dot_dimension_numbers<[1], [0], [0], [1], [0, 0, 1, 1], [], []>} : vector<2x16xf32>, vector<16x256xf32>, vector<2x256xf32> -> vector<2x256xf32>
    %c0_58 = arith.constant 0 : index
    %c0_59 = arith.constant 0 : index
    %193 = vector.load %arg4[%c0_58, %c0_59] : memref<2x256xf32, #tpu.memory_space<vmem>>, vector<2x256xf32>
    tpu.vector_store %arg4[%c0_58, %c0_59], %192 {strides = array<i32>} : memref<2x256xf32, #tpu.memory_space<vmem>>, vector<2x256xf32>,
    %c488 = arith.constant 488 : index
    %c0_60 = arith.constant 0 : index
    %194 = vector.load %arg1[%c488, %c0_60] : memref<808x128xf32, #tpu.memory_space<vmem>>, vector<256x50xf32>
    %c744 = arith.constant 744 : index
    %c0_61 = arith.constant 0 : index
    %195 = vector.load %arg1[%c744, %c0_61] : memref<808x128xf32, #tpu.memory_space<vmem>>, vector<50x1xf32>
    %c800 = arith.constant 800 : index
    %c0_62 = arith.constant 0 : index
    %196 = vector.load %arg1[%c800, %c0_62] : memref<808x128xf32, #tpu.memory_space<vmem>>, vector<8x128xf32>
    %197 = vector.extract_strided_slice %196 {offsets = [0, 0], sizes = [1, 50], strides = [1, 1]} : vector<8x128xf32> to vector<1x50xf32>
    %198 = vector.extract_strided_slice %196 {offsets = [1, 0], sizes = [1, 1], strides = [1, 1]} : vector<8x128xf32> to vector<1x1xf32>
    %cst_63 = arith.constant dense<0.000000e+00> : vector<2x50xf32>
    %199 = tpu.matmul %192, %194, %cst_63 {dimension_numbers = #tpu.dot_dimension_numbers<[1], [0], [0], [1], [0, 0, 1, 1], [], []>} : vector<2x256xf32>, vector<256x50xf32>, vector<2x50xf32> -> vector<2x50xf32>
    %200 = vector.broadcast %197 : vector<1x50xf32> to vector<2x50xf32>
    %201 = arith.addf %199, %200 : vector<2x50xf32>
    %cst_64 = arith.constant 0.000000e+00 : f32
    %202 = vector.broadcast %cst_64 : f32 to vector<2x50xf32>
    %203 = arith.maximumf %201, %202 : vector<2x50xf32>
    %cst_65 = arith.constant dense<0.000000e+00> : vector<2x1xf32>
    %204 = tpu.matmul %203, %195, %cst_65 {dimension_numbers = #tpu.dot_dimension_numbers<[1], [0], [0], [1], [0, 0, 1, 1], [], []>} : vector<2x50xf32>, vector<50x1xf32>, vector<2x1xf32> -> vector<2x1xf32>
    %205 = vector.broadcast %198 : vector<1x1xf32> to vector<2x1xf32>
    %206 = arith.addf %204, %205 : vector<2x1xf32>
    %c0_66 = arith.constant 0 : index
    %c0_67 = arith.constant 0 : index
    %207 = vector.load %arg3[%c0_66, %c0_67] : memref<2x1xf32, #tpu.memory_space<vmem>>, vector<2x1xf32>
    tpu.vector_store %arg3[%c0_66, %c0_67], %206 {strides = array<i32>} : memref<2x1xf32, #tpu.memory_space<vmem>>, vector<2x1xf32>,
    return
  }
}

</mosaic_0001>

<bundles_post_ra>
// kernel: transformer_forward.1
= control target key start
LH: loop header
LB: loop body
LE: loop exit
PB: predicated region body
PF: predicated region fallthrough
CT: control target
= control target key end

     0   :  { %10 = vsyncpa [#allocation3], 0  ;;  %s3316_s0 = inlined_call_operand.hbm [shape: f32[16,32], index: 0, kind: input, shape index: {}]   ;;  %s3317_s1 = inlined_call_operand.hbm [shape: f32[808,128], index: 1, kind: input, shape index: {}]   ;;  %s3318_s2 = inlined_call_operand.hbm [shape: f32[16,256], index: 2, kind: input, shape index: {}]   ;;  %s3319_s3 = inlined_call_operand.vmem [shape: f32[2,1], index: 3, kind: output, shape index: {0}]   ;;  %s3320_s4 = inlined_call_operand.hbm [shape: f32[2,256], index: 4, kind: output, shape index: {1}]  }
   0x1   :  { %11 = vsyncpa [#allocation6], 0 }
   0x2   :  { %12 = vsyncpa [#allocation4], 0  ;;  %s2922_s15 = smov [#allocation5]   ;;  %s2923_s17 = smov [#allocation2]  }
   0x3   :  { %s30_s16 = sshll.u32 %s2922_s15, 4  ;;  %s18_s18 = sshll.u32 %s2923_s17, 4  ;;  %s31_s16 = int_to_ptr.vmem [resolvable:$true] %s30_s16  ;;  %s2961_s18 = int_to_ptr.vmem [resolvable:$true] %s18_s18 }
   0x4   :  { %s2828_s21 = scalar_lea.hbm %s3317_s1, 12928 }
   0x5   :  { %p2829_p0 = scmp.ne.s32.totalorder %s3317_s1, %s2828_s21  ;;  %p2832_p1 = scmp.lt.u32.totalorder %s2828_s21, %s3317_s1 }
   0x7   :  { %p2834_p2 = pnand %p2832_p1, %p2829_p0 }
   0x9   :  { %2837 = shalt.err (!%p2834_p2)
}
   0xa   :  { %s2838_s26 = scalar_lea.vmem %s31_s16, 12928  ;;  %p2843_p4 = scmp.lt.s32.totalorder %s31_s16, %s31_s16 }
   0xb   :  { %p2839_p3 = scmp.ne.s32.totalorder %s31_s16, %s2838_s26  ;;  %p2844_p5 = scmp.lt.s32.totalorder %s2838_s26, %s2838_s26 }
   0xd   :  { %p2845_p6 = por %p2844_p5, %p2843_p4 }
   0xf   :  { %p2846_p7 = pnand %p2845_p6, %p2839_p3 }
  0x11   :  { %2849 = shalt.err (!%p2846_p7)
}
  0x12   :  { %s2924_s27 = smov 128   ;;  %s2925_s28 = smov 8  }
  0x13   :  { %36 = dma.hbm_to_vmem [thread:$0]  %s3317_s1, 12928, %s31_s16, [#allocation6], %s2924_s27, %s2924_s27, %s2925_s28  }
  0x14   :  { %s2850_s7 = scalar_lea.hbm %s3316_s0, 256 }
  0x15   :  { %p2851_p8 = scmp.ne.s32.totalorder %s3316_s0, %s2850_s7  ;;  %p2854_p9 = scmp.lt.u32.totalorder %s2850_s7, %s3316_s0 }
  0x17   :  { %p2856_p10 = pnand %p2854_p9, %p2851_p8 }
  0x19   :  { %2859 = shalt.err (!%p2856_p10)
}
  0x1a   :  { %s2860_s12 = scalar_lea.vmem %s2961_s18, 256  ;;  %p2865_p12 = scmp.lt.s32.totalorder %s2961_s18, %s2961_s18 }
  0x1b   :  { %p2861_p11 = scmp.ne.s32.totalorder %s2961_s18, %s2860_s12  ;;  %p2866_p13 = scmp.lt.s32.totalorder %s2860_s12, %s2860_s12 }
  0x1d   :  { %p2867_p0 = por %p2866_p13, %p2865_p12 }
  0x1f   :  { %p2868_p1 = pnand %p2867_p0, %p2861_p11 }
  0x21   :  { %2871 = shalt.err (!%p2868_p1)
}
  0x22   :  { %24 = dma.hbm_to_vmem [thread:$0]  %s3316_s0, 256, %s2961_s18, [#allocation3], %s2924_s27, %s2924_s27, %s2925_s28  }
  0x23   :  { %s2926_s14 = smov [#allocation7]   ;;  %s2872_s19 = scalar_lea.hbm %s3318_s2, 512 }
  0x24   :  { %s42_s15 = sshll.u32 %s2926_s14, 4  ;;  %p2873_p2 = scmp.ne.s32.totalorder %s3318_s2, %s2872_s19  ;;  %s43_s15 = int_to_ptr.vmem [resolvable:$true] %s42_s15 }
  0x25   :  { %p2876_p3 = scmp.lt.u32.totalorder %s2872_s19, %s3318_s2 }
  0x27   :  { %p2878_p4 = pnand %p2876_p3, %p2873_p2 }
  0x29   :  { %2881 = shalt.err (!%p2878_p4)
}
  0x2a   :  { %s2882_s24 = scalar_lea.vmem %s43_s15, 512  ;;  %p2887_p6 = scmp.lt.s32.totalorder %s43_s15, %s43_s15 }
  0x2b   :  { %p2883_p5 = scmp.ne.s32.totalorder %s43_s15, %s2882_s24  ;;  %p2888_p7 = scmp.lt.s32.totalorder %s2882_s24, %s2882_s24 }
  0x2d   :  { %p2889_p8 = por %p2888_p7, %p2887_p6 }
  0x2f   :  { %p2890_p9 = pnand %p2889_p8, %p2883_p5 }
  0x31   :  { %2893 = shalt.err (!%p2890_p9)
}
  0x32   :  { %s2927_s0 = smov 256   ;;  %s2928_s18 = smov 16  }
  0x33   :  { %48 = dma.hbm_to_vmem [thread:$0]  %s3318_s2, 512, %s43_s15, [#allocation6], %s2927_s0, %s2927_s0, %s2928_s18  }
  0x34   :  { %2916 = dma.done.wait [#allocation3], 256  }
  0x35   :  { %2917 = vsyncadd [#allocation3], 4294967040 }
  0x36   :  { %2918 = dma.done.wait [#allocation6], 13440  }
  0x37   :  { %2919 = vsyncadd [#allocation6], 4294953856  ;;  %vm108_vm0 = vcmask 261120   ;;  %v83_v0 = vld [vmem:[#allocation5] sm:$0xff]  ;;  %v84_v1 = vld [vmem:[#allocation5 + $0x8] sm:$0xff]  ;;  %s2929_s2 = smov 32   ;;  %v104_v18 = vlaneseq }
  0x38   :  { %v85_v2 = vld [vmem:[#allocation5 + $0x10] sm:$0xff]  ;;  %v2465_v3 = vpack.c.bf16 %v84_v1, %v83_v0  ;;  %v86_v4 = vld [vmem:[#allocation5 + $0x18] sm:$0xff]  ;;  %v60_v7 = vld [vmem:[#allocation5 + $0x160] sm:$0xff]  ;;  %s2930_s27 = smov 96   ;;  %vm353_vm2 = vcmask 523264   ;;  %s2931_s28 = smov 64  }
  0x39   :  { %v3004_v5 = vld [vmem:[#allocation2] sm:$0xff]  ;;  %v2469_v6 = vpack.c.bf16 %v86_v4, %v85_v2  ;;  %204 = vrot.lane.b32.xlu1 %v60_v7, %s2929_s2  ;;  %v61_v9 = vld [vmem:[#allocation5 + $0x168] sm:$0xff]  ;;  %v59_v10 = vld [vmem:[#allocation5 + $0x158] sm:$0xff]  ;;  %v3028_v21 = vshrl.u32 %v104_v18, 7  ;;  %vm1710_vm3 = vcmask 785408   ;;  %vm1717_vm4 = vcmask 130048  }
  0x3a   :  { %2238 = vmatprep.mubr.msk.f32.mxu0 %vm108_vm0, %v3004_v5  ;;  %v58_v8 = vld [vmem:[#allocation5 + $0x150] sm:$0xff]  ;;  %2466 = vmatprep.subr.bf16.mxu0 %v2465_v3  ;;  %v3011_v11 = vld [vmem:[#allocation2 + $0x8] sm:$0xff]  ;;  %v65_v14 = vld [vmem:[#allocation5 + $0x188] sm:$0xff]  ;;  %vm1927_vm5 = vcmask 1041408   ;;  %vm2934_vm6 = vmmov 0   ;;  %vm1923_vm7 = vcmask 408576  }
  0x3b   :  { %2468 = vmatpush3.bf16.msra.mxu0 %v2465_v3  ;;  %200 = vrot.lane.b32.xlu0 %v58_v8, %s2929_s2  ;;  %v63_v12 = vld [vmem:[#allocation5 + $0x178] sm:$0xff]  ;;  %v62_v13 = vld [vmem:[#allocation5 + $0x170] sm:$0xff]  ;;  %v64_v15 = vld [vmem:[#allocation5 + $0x180] sm:$0xff]  ;;  %v3031_v22 = vsub.s32 0, %v3028_v21  ;;  %s2935_s29 = smov [#allocation8]  }
  0x3c   :  { %2470 = vmatprep.subr.bf16.mxu0 %v2469_v6  ;;  %v3035_v24 = vld [vmem:[#allocation5 + $0xa0] sm:$0xff]  ;;  %vm3069_vm1 = vmpackc.low %vm108_vm0, %vm108_vm0  ;;  %v69_v1 = vld [vmem:[#allocation5 + $0x1a8] sm:$0xff]  ;;  %s2011_s30 = sshll.u32 %s2935_s29, 4  ;;  %s2012_s30 = int_to_ptr.vmem [resolvable:$true] %s2011_s30 }
  0x3d   :  { %206 = vrot.lane.b32.xlu1 %v61_v9, %s2929_s2  ;;  %v107_v26 = vrot.slane %v3035_v24, %v3031_v22  ;;  %v68_v0 = vld [vmem:[#allocation5 + $0x1a0] sm:$0xff]  ;;  %v70_v2 = vld [vmem:[#allocation5 + $0x1b0] sm:$0xff]  ;;  %v71_v4 = vld [vmem:[#allocation5 + $0x1b8] sm:$0xff]  ;;  %s2894_s5 = scalar_lea.vmem %s2012_s30, 64  ;;  %p2899_p11 = scmp.lt.s32.totalorder %s2012_s30, %s2012_s30 }
  0x3e   :  { %v3090_v3 = vpack.c.bf16 %v69_v1, %v68_v0  ;;  %v3098_v7 = vld [vmem:[#allocation5 + $0x198] sm:$0xff]  ;;  %v3100_v8 = vld [vmem:[#allocation5 + $0x190] sm:$0xff]  ;;  %v72_v18 = vld [vmem:[#allocation5 + $0x1c0] sm:$0xff]  ;;  %p2895_p10 = scmp.ne.s32.totalorder %s2012_s30, %s2894_s5  ;;  %p2900_p12 = scmp.lt.s32.totalorder %s2894_s5, %s2894_s5 }
  0x3f   :  { %2472 = vmatpush3.bf16.msra.mxu0 %v2469_v6  ;;  %202 = vrot.lane.b32.xlu0 %v59_v10, %s2929_s2  ;;  %v3092_v6 = vpack.c.bf16 %v71_v4, %v70_v2 }
  0x40   :  { %2498 = vmatprep.subr.bf16.mxu0 %v3090_v3  ;;  %p2901_p13 = por %p2900_p12, %p2899_p11 }
  0x41   :  { %210 = vrot.lane.b32.xlu1 %v63_v12, %s2929_s2 }
  0x42   :  { %2239 = vmatmul.mubr.msk.f32.vlgmr.msra.gmra.mrb[0].mxu0 %vm108_vm0, %v3011_v11  ;;  %p2902_p0 = pnand %p2901_p13, %p2895_p10 }
  0x43   :  { %208 = vrot.lane.b32.xlu0 %v62_v13, %s2929_s2  ;;  %2500 = vmatpush3.bf16.msra.mxu0 %v3090_v3 }
  0x44   :  { %2502 = vmatprep.subr.bf16.mxu0 %v3092_v6 }
  0x45   :  { %214 = vrot.lane.b32.xlu1 %v65_v14, %s2929_s2 }
  0x47   :  { %212 = vrot.lane.b32.xlu0 %v64_v15, %s2929_s2  ;;  %2504 = vmatpush3.bf16.msra.mxu0 %v3092_v6 }
  0xab   :  { %v3020_v16 = vpop.permute.xlu1 %204 }
  0xad   :  { %v3022_v17 = vpop.permute.xlu0 %200 }
  0xaf   :  { %v3024_v19 = vpop.permute.xlu1 %206 }
  0xb1   :  { %v3026_v20 = vpop.permute.xlu0 %202 }
  0xb3   :  { %v3033_v23 = vpop.permute.xlu1 %210 }
  0xb5   :  { %v3037_v25 = vpop.permute.xlu0 %208 }
  0xb7   :  { %v3041_v28 = vpop.permute.xlu1 %214 }
  0xb9   :  { %v3043_v31 = vpop.permute.xlu0 %212 }
 0x115   :  { %v2240_v27 = vpop.f32.mrb[0].mxu0 }
 0x116   :  { %v187_v29 = vadd.f32 %v2240_v27, %v107_v26  ;;  %v181_v30 = vpop.f32.mrb[1].mxu0 }
 0x117   :  { %v182_v32 = vadd.f32 %v181_v30, %v107_v26  ;;  %v73_v26 = vld [vmem:[#allocation5 + $0x1c8] sm:$0xff]  ;;  %v75_v30 = vld [vmem:[#allocation5 + $0x1d8] sm:$0xff] }
 0x118   :  { %v231_v33 = vmul.f32 %v3041_v28, %v187_v29  ;;  %v227_v34 = vmul.f32 %v3024_v19, %v187_v29  ;;  %v225_v35 = vmul.f32 %v3026_v20, %v187_v29  ;;  %v229_v36 = vmul.f32 %v3033_v23, %v187_v29 }
 0x119   :  { %v230_v37 = vmul.f32 %v3043_v31, %v182_v32  ;;  %v190_v38 = vmul.f32 0.35355338, %v182_v32  ;;  %v226_v39 = vmul.f32 %v3020_v16, %v182_v32  ;;  %v224_v40 = vmul.f32 %v3022_v17, %v182_v32 }
 0x11a   :  { %v228_v41 = vmul.f32 %v3037_v25, %v182_v32  ;;  %v191_v63 = vmul.f32 0.35355338, %v187_v29  ;;  %v3107_v27 = vpack.c.bf16 %v73_v26, %v72_v18  ;;  %v74_v29 = vld [vmem:[#allocation5 + $0x1d0] sm:$0xff] }
 0x11b   :  { %v3053_v42 = vpack.i.bf16 %v231_v33, %v230_v37  ;;  %2257 = vmatprep.mubr.msk.f32.mxu1 %vm108_vm0, %v190_v38  ;;  %v2721_v43 = vpack.i.bf16 %v227_v34, %v226_v39  ;;  %v3056_v44 = vpack.i.bf16 %v225_v35, %v224_v40  ;;  %v3113_v32 = vpack.c.bf16 %v75_v30, %v74_v29 }
 0x11c   :  { %v3058_v45 = vpack.i.bf16 %v229_v36, %v228_v41  ;;  %2506 = vmatprep.subr.bf16.mxu0 %v3107_v27 }
 0x11d   :  { %2722 = vrot.lane.b32.xlu1 %v2721_v43, %s2930_s27  ;;  %2717 = vrot.lane.b32.xlu0 %v3056_v44, %s2930_s27 }
 0x11e   :  { %2508 = vmatpush3.bf16.msra.mxu0 %v3107_v27 }
 0x11f   :  { %2510 = vmatprep.subr.bf16.mxu0 %v3113_v32 }
 0x121   :  { %2727 = vrot.lane.b32.xlu0 %v3058_v45, %s2930_s27  ;;  %2732 = vrot.lane.b32.xlu1 %v3053_v42, %s2930_s27 }
 0x122   :  { %2512 = vmatpush3.bf16.msra.mxu0 %v3113_v32 }
 0x18f   :  { %v2723_v46 = vpop.permute.xlu1 %2722  ;;  %v2718_v47 = vpop.permute.xlu0 %2717 }
 0x190   :  { %v2725_v48 = vunpack.i.h.bf16 %v2723_v46  ;;  %v2724_v49 = vunpack.i.l.bf16 %v2723_v46  ;;  %v2720_v50 = vunpack.i.h.bf16 %v2718_v47  ;;  %v2719_v51 = vunpack.i.l.bf16 %v2718_v47 }
 0x192   :  { %v2473_v53 = vpack.c.bf16 %v2720_v50, %v2719_v51  ;;  %v2479_v54 = vpack.c.bf16 %v2725_v48, %v2724_v49 }
 0x193   :  { %v2728_v55 = vpop.permute.xlu0 %2727  ;;  %v2733_v59 = vpop.permute.xlu1 %2732 }
 0x194   :  { %2475 = vmatprep.subr.msk.bf16.mxu1 %vm3069_vm1, %v2473_v53  ;;  %v2730_v56 = vunpack.i.h.bf16 %v2728_v55  ;;  %v2729_v57 = vunpack.i.l.bf16 %v2728_v55  ;;  %v2735_v60 = vunpack.i.h.bf16 %v2733_v59  ;;  %v2734_v61 = vunpack.i.l.bf16 %v2733_v59  ;;  %v88_v59 = vld [vmem:[#allocation5 + $0x28] sm:$0xff] }
 0x195   :  { %2478 = vmatpush3.bf16.xpose.msk.msra.mxu1 %vm3069_vm1, %v2473_v53 }
 0x196   :  { %2481 = vmatprep.subr.msk.bf16.mxu1 %vm3069_vm1, %v2479_v54  ;;  %v2485_v58 = vpack.c.bf16 %v2730_v56, %v2729_v57  ;;  %v2491_v62 = vpack.c.bf16 %v2735_v60, %v2734_v61  ;;  %v89_v60 = vld [vmem:[#allocation5 + $0x30] sm:$0xff] }
 0x19d   :  { %2484 = vmatpush3.bf16.xpose.msk.msra.mxu1 %vm3069_vm1, %v2479_v54 }
 0x19e   :  { %2487 = vmatprep.subr.msk.bf16.mxu1 %vm3069_vm1, %v2485_v58 }
 0x1a5   :  { %2490 = vmatpush3.bf16.xpose.msk.msra.mxu1 %vm3069_vm1, %v2485_v58  ;;  %v87_v58 = vld [vmem:[#allocation5 + $0x20] sm:$0xff] }
 0x1a6   :  { %2493 = vmatprep.subr.msk.bf16.mxu1 %vm3069_vm1, %v2491_v62  ;;  %v2529_v61 = vpack.c.bf16 %v88_v59, %v87_v58 }
 0x1ad   :  { %2496 = vmatpush3.bf16.xpose.msk.msra.mxu1 %vm3069_vm1, %v2491_v62  ;;  %v90_v62 = vld [vmem:[#allocation5 + $0x38] sm:$0xff] }
 0x1ae   :  { %2530 = vmatprep.subr.bf16.mxu1 %v2529_v61 }
 0x1b4   :  { %2258 = vmatmul.mubr.msk.f32.vlgmr.msra.gmra.mrb[0].mxu1 %vm108_vm0, %v191_v63  ;;  %v2533_v63 = vpack.c.bf16 %v90_v62, %v89_v60 }
 0x1b5   :  { %2532 = vmatpush3.bf16.msra.mxu1 %v2529_v61 }
 0x1b6   :  { %2534 = vmatprep.subr.bf16.mxu1 %v2533_v63 }
 0x1b9   :  { %2536 = vmatpush3.bf16.msra.mxu1 %v2533_v63 }
 0x287   :  { %v2259_v9 = vpop.f32.mrb[0].mxu1 }
 0x288   :  { %v350_v10 = vadd.f32 %v2259_v9, %v3098_v7  ;;  %v344_v12 = vpop.f32.mrb[1].mxu1 }
 0x289   :  { %v345_v13 = vadd.f32 %v344_v12, %v3100_v8 }
 0x28a   :  { %v357_v14 = vsel %vm353_vm2, %v350_v10, -inf }
 0x28b   :  { %358 = vmax.xlane.f32.xlu1 %v357_v14  ;;  %v354_v15 = vsel %vm353_vm2, %v345_v13, -inf  ;;  %v3128_v14 = vsub.s32 1, %v3028_v21 }
 0x28c   :  { %355 = vmax.xlane.f32.xlu0 %v354_v15 }
 0x28d   :  { %v559_v15 = vrot.slane %v3035_v24, %v3128_v14 }
 0x29c   :  { %2742 = vrot.lane.b32.xlu1 %v2721_v43, %s2931_s28 }
 0x2a0   :  { %2752 = vrot.lane.b32.xlu1 %v3053_v42, %s2931_s28 }
 0x2a2   :  { %2737 = vrot.lane.b32.xlu0 %v3056_v44, %s2931_s28 }
 0x2a6   :  { %2747 = vrot.lane.b32.xlu0 %v3058_v45, %s2931_s28 }
 0x318   :  { %v359_v33 = vpop.xlane.xlu1 %358 }
 0x319   :  { %v361_v34 = vsub.f32 %v350_v10, %v359_v33  ;;  %v356_v35 = vpop.xlane.xlu0 %355 }
 0x31a   :  { %v360_v36 = vsub.f32 %v345_v13, %v356_v35 }
 0x31b   :  { %v364_v37 = vmul.f32 1.442695, %v361_v34 }
 0x31c   :  { %v362_v38 = vmul.f32 1.442695, %v360_v36  ;;  %v2743_v43 = vpop.permute.xlu1 %2742 }
 0x31d   :  { %v2738_v39 = vpop.permute.xlu0 %2737  ;;  %v2745_v44 = vunpack.i.h.bf16 %v2743_v43  ;;  %v2744_v46 = vunpack.i.l.bf16 %v2743_v43  ;;  %v94_v43 = vld [vmem:[#allocation5 + $0x58] sm:$0xff] }
 0x31e   :  { %2796 = vpow2.f32 %v362_v38  ;;  %v2740_v40 = vunpack.i.h.bf16 %v2738_v39  ;;  %v2739_v41 = vunpack.i.l.bf16 %v2738_v39 }
 0x31f   :  { %2798 = vpow2.f32 %v364_v37  ;;  %v2517_v45 = vpack.c.bf16 %v2745_v44, %v2744_v46  ;;  %v95_v46 = vld [vmem:[#allocation5 + $0x60] sm:$0xff] }
 0x320   :  { %v2513_v42 = vpack.c.bf16 %v2740_v40, %v2739_v41  ;;  %v2753_v53 = vpop.permute.xlu1 %2752  ;;  %v92_v41 = vld [vmem:[#allocation5 + $0x48] sm:$0xff] }
 0x321   :  { %v2748_v47 = vpop.permute.xlu0 %2747  ;;  %v2755_v54 = vunpack.i.h.bf16 %v2753_v53  ;;  %v2754_v55 = vunpack.i.l.bf16 %v2753_v53  ;;  %v100_v53 = vld [vmem:[#allocation5 + $0x88] sm:$0xff] }
 0x322   :  { %2514 = vmatprep.subr.bf16.mxu0 %v2513_v42  ;;  %v2750_v50 = vunpack.i.h.bf16 %v2748_v47  ;;  %v2749_v51 = vunpack.i.l.bf16 %v2748_v47  ;;  %v96_v47 = vld [vmem:[#allocation5 + $0x68] sm:$0xff] }
 0x323   :  { %v2525_v57 = vpack.c.bf16 %v2755_v54, %v2754_v55 }
 0x324   :  { %v2521_v56 = vpack.c.bf16 %v2750_v50, %v2749_v51  ;;  %v99_v51 = vld [vmem:[#allocation5 + $0x80] sm:$0xff] }
 0x325   :  { %v2553_v54 = vpack.c.bf16 %v100_v53, %v99_v51 }
 0x328   :  { %v2797_v48 = vpop.eup %2796 }
 0x329   :  { %v2799_v49 = vpop.eup %2798  ;;  %2276 = vmatprep.mubr.msk.f32.mxu0 %vm353_vm2, %v2797_v48 }
 0x32a   :  { %2277 = vmatmul.mubr.msk.f32.vlgmr.msra.gmra.mrb[2].mxu0 %vm353_vm2, %v2799_v49 }
 0x32b   :  { %2516 = vmatpush3.bf16.msra.mxu0 %v2513_v42  ;;  %v93_v42 = vld [vmem:[#allocation5 + $0x50] sm:$0xff] }
 0x32c   :  { %2518 = vmatprep.subr.bf16.mxu0 %v2517_v45  ;;  %v2541_v44 = vpack.c.bf16 %v94_v43, %v93_v42 }
 0x32f   :  { %2520 = vmatpush3.bf16.msra.mxu0 %v2517_v45  ;;  %v98_v45 = vld [vmem:[#allocation5 + $0x78] sm:$0xff] }
 0x330   :  { %2522 = vmatprep.subr.bf16.mxu0 %v2521_v56 }
 0x333   :  { %2524 = vmatpush3.bf16.msra.mxu0 %v2521_v56 }
 0x334   :  { %2526 = vmatprep.subr.bf16.mxu0 %v2525_v57 }
 0x337   :  { %2528 = vmatpush3.bf16.msra.mxu0 %v2525_v57 }
 0x3fd   :  { %v2278_v0 = vpop.f32.mrb[2].mxu0 }
 0x3fe   :  { %2800 = vrcp.f32 %v2278_v0  ;;  %v438_v1 = vpop.f32.mrb[3].mxu0 }
 0x3ff   :  { %2802 = vrcp.f32 %v438_v1 }
 0x408   :  { %v2801_v2 = vpop.eup %2800 }
 0x409   :  { %v2803_v4 = vpop.eup %2802  ;;  %v450_v10 = vmul.f32 %v2801_v2, %v2799_v49  ;;  %v2545_v49 = vpack.c.bf16 %v96_v47, %v95_v46 }
 0x40a   :  { %v449_v9 = vmul.f32 %v2803_v4, %v2797_v48  ;;  %v97_v48 = vld [vmem:[#allocation5 + $0x70] sm:$0xff] }
 0x40b   :  { %v2549_v50 = vpack.c.bf16 %v98_v45, %v97_v48  ;;  %2546 = vmatprep.subr.bf16.mxu1 %v2545_v49 }
 0x40c   :  { %2295 = vmatprep.mubr.msk.f32.mxu0 %vm353_vm2, %v449_v9 }
 0x40d   :  { %2296 = vmatmul.mubr.msk.f32.vlgmr.msra.gmra.mrb[4].mxu0 %vm353_vm2, %v450_v10  ;;  %v676_v10 = vsub.s32 2, %v3028_v21 }
 0x4e0   :  { %v2297_v12 = vpop.f32.mrb[4].mxu0 }
 0x4e1   :  { %v547_v13 = vpop.f32.mrb[5].mxu0 }
 0x4e2   :  { %2306 = vmatprep.mubr.msk.f32.mxu1 %vm108_vm0, %v547_v13 }
 0x4e3   :  { %2307 = vmatmul.mubr.msk.f32.vlgmr.msra.gmra.mrb[2].mxu1 %vm108_vm0, %v2297_v12  ;;  %v682_v12 = vsub.s32 3, %v3028_v21 }
 0x4e4   :  { %2548 = vmatpush3.bf16.msra.mxu1 %v2545_v49  ;;  %v775_v49 = vsub.s32 5, %v3028_v21 }
 0x4e5   :  { %2550 = vmatprep.subr.bf16.mxu1 %v2549_v50 }
 0x4e6   :  { %v776_v45 = vrot.slane %v3035_v24, %v775_v49 }
 0x4e8   :  { %2552 = vmatpush3.bf16.msra.mxu1 %v2549_v50 }
 0x4e9   :  { %2554 = vmatprep.subr.bf16.mxu1 %v2553_v54 }
 0x4ec   :  { %2556 = vmatpush3.bf16.msra.mxu1 %v2553_v54 }
 0x5b6   :  { %v2308_v18 = vpop.f32.mrb[2].mxu1 }
 0x5b7   :  { %v638_v26 = vadd.f32 %v2308_v18, %v559_v15  ;;  %v632_v29 = vpop.f32.mrb[3].mxu1 }
 0x5b8   :  { %v633_v30 = vadd.f32 %v632_v29, %v559_v15  ;;  %v677_v15 = vrot.slane %v3035_v24, %v676_v10  ;;  %v683_v29 = vrot.slane %v3035_v24, %v682_v12 }
 0x5b9   :  { %v3133_v33 = vadd.f32 %v638_v26, %v3011_v11  ;;  %v91_v11 = vld [vmem:[#allocation5 + $0x40] sm:$0xff] }
 0x5ba   :  { %v641_v34 = vadd.f32 %v633_v30, %v3004_v5  ;;  %v2537_v5 = vpack.c.bf16 %v92_v41, %v91_v11  ;;  %v102_v11 = vld [vmem:[#allocation5 + $0x98] sm:$0xff] }
 0x5bb   :  { %v646_v35 = vsel %vm108_vm0, %v3133_v33, 0.0  ;;  %v653_v39 = vmul.f32 %v3133_v33, %v3133_v33 }
 0x5bc   :  { %647 = vadd.xlane.f32.xlu1 %v646_v35  ;;  %v643_v36 = vsel %vm108_vm0, %v641_v34, 0.0  ;;  %v652_v37 = vmul.f32 %v641_v34, %v641_v34  ;;  %2538 = vmatprep.subr.bf16.mxu0 %v2537_v5 }
 0x5bd   :  { %644 = vadd.xlane.f32.xlu0 %v643_v36  ;;  %v657_v40 = vsel %vm108_vm0, %v653_v39, 0.0  ;;  %2540 = vmatpush3.bf16.msra.mxu0 %v2537_v5  ;;  %v688_v5 = vsub.s32 4, %v3028_v21 }
 0x5be   :  { %v654_v38 = vsel %vm108_vm0, %v652_v37, 0.0  ;;  %2542 = vmatprep.subr.bf16.mxu0 %v2541_v44 }
 0x5c1   :  { %655 = vadd.xlane.f32.xlu0 %v654_v38  ;;  %2544 = vmatpush3.bf16.msra.mxu0 %v2541_v44 }
 0x5c5   :  { %658 = vadd.xlane.f32.xlu0 %v657_v40  ;;  %v101_v40 = vld [vmem:[#allocation5 + $0x90] sm:$0xff] }
 0x5c6   :  { %v2557_v41 = vpack.c.bf16 %v102_v11, %v101_v40 }
 0x5c8   :  { %2558 = vmatprep.subr.bf16.mxu1 %v2557_v41 }
 0x5c9   :  { %2560 = vmatpush3.bf16.msra.mxu1 %v2557_v41 }
 0x5ca   :  { %2594 = vmatprep.subr.bf16.mxu1 %v3090_v3 }
 0x649   :  { %v648_v57 = vpop.xlane.xlu1 %647 }
 0x64a   :  { %v645_v55 = vpop.xlane.xlu0 %644  ;;  %v651_v59 = vmul.f32 0.03125, %v648_v57 }
 0x64b   :  { %v650_v56 = vmul.f32 0.03125, %v645_v55 }
 0x64c   :  { %v663_v0 = vmul.f32 %v651_v59, %v651_v59  ;;  %v667_v30 = vsub.f32 %v3133_v33, %v651_v59  ;;  %v689_v33 = vrot.slane %v3035_v24, %v688_v5  ;;  %v902_v59 = vld [vmem:[#allocation5 + $0xa8] sm:$0xff] }
 0x64d   :  { %v662_v60 = vmul.f32 %v650_v56, %v650_v56  ;;  %v666_v13 = vsub.f32 %v641_v34, %v650_v56 }
 0x64e   :  { %v656_v58 = vpop.xlane.xlu0 %655 }
 0x64f   :  { %v660_v61 = vmul.f32 0.03125, %v656_v58 }
 0x651   :  { %v664_v62 = vsub.f32 %v660_v61, %v662_v60  ;;  %v903_v60 = vld [vmem:[#allocation5 + $0xb0] sm:$0xff] }
 0x652   :  { %v659_v63 = vpop.xlane.xlu0 %658  ;;  %v2561_v61 = vpack.c.bf16 %v903_v60, %v902_v59 }
 0x653   :  { %v668_v1 = vadd.f32 1e-05, %v664_v62  ;;  %v661_v2 = vmul.f32 0.03125, %v659_v63  ;;  %v904_v62 = vld [vmem:[#allocation5 + $0xb8] sm:$0xff]  ;;  %v905_v63 = vld [vmem:[#allocation5 + $0xc0] sm:$0xff] }
 0x654   :  { %2562 = vmatprep.subr.bf16.mxu0 %v2561_v61 }
 0x655   :  { %2804 = vrsqrt.f32 %v668_v1  ;;  %v665_v4 = vsub.f32 %v661_v2, %v663_v0  ;;  %v2565_v0 = vpack.c.bf16 %v905_v63, %v904_v62 }
 0x657   :  { %v669_v9 = vadd.f32 1e-05, %v665_v4 }
 0x659   :  { %2806 = vrsqrt.f32 %v669_v9 }
 0x65f   :  { %v2805_v18 = vpop.eup %2804 }
 0x660   :  { %v672_v26 = vmul.f32 %v2805_v18, %v666_v13 }
 0x662   :  { %v678_v35 = vmul.f32 %v677_v15, %v672_v26 }
 0x663   :  { %v2807_v36 = vpop.eup %2806 }
 0x664   :  { %v673_v37 = vmul.f32 %v2807_v36, %v667_v30  ;;  %v684_v38 = vadd.f32 %v683_v29, %v678_v35 }
 0x666   :  { %v679_v39 = vmul.f32 %v677_v15, %v673_v37  ;;  %2317 = vmatprep.mubr.msk.f32.mxu0 %vm108_vm0, %v684_v38 }
 0x668   :  { %v685_v34 = vadd.f32 %v683_v29, %v679_v39  ;;  %v892_v39 = vsub.s32 6, %v3028_v21 }
 0x66a   :  { %2318 = vmatmul.mubr.msk.f32.vlgmr.msra.gmra.mrb[6].mxu0 %vm108_vm0, %v685_v34  ;;  %v893_v11 = vrot.slane %v3035_v24, %v892_v39 }
 0x66b   :  { %2564 = vmatpush3.bf16.msra.mxu0 %v2561_v61 }
 0x66c   :  { %2566 = vmatprep.subr.bf16.mxu0 %v2565_v0 }
 0x66f   :  { %2568 = vmatpush3.bf16.msra.mxu0 %v2565_v0 }
 0x73d   :  { %v2319_v42 = vpop.f32.mrb[6].mxu0 }
 0x73e   :  { %v768_v43 = vadd.f32 %v2319_v42, %v689_v33  ;;  %v762_v44 = vpop.f32.mrb[7].mxu0 }
 0x73f   :  { %v763_v46 = vadd.f32 %v762_v44, %v689_v33 }
 0x740   :  { %v772_v48 = vmax.f32 %v768_v43, 0.0 }
 0x741   :  { %v771_v47 = vmax.f32 %v763_v46, 0.0 }
 0x743   :  { %2336 = vmatprep.mubr.msk.f32.mxu1 %vm353_vm2, %v771_v47 }
 0x744   :  { %2337 = vmatmul.mubr.msk.f32.vlgmr.msra.gmra.mrb[4].mxu1 %vm353_vm2, %v772_v48 }
 0x745   :  { %2596 = vmatpush3.bf16.msra.mxu1 %v3090_v3 }
 0x746   :  { %2598 = vmatprep.subr.bf16.mxu1 %v3092_v6 }
 0x749   :  { %2600 = vmatpush3.bf16.msra.mxu1 %v3092_v6 }
 0x74a   :  { %2602 = vmatprep.subr.bf16.mxu1 %v3107_v27 }
 0x74d   :  { %2604 = vmatpush3.bf16.msra.mxu1 %v3107_v27 }
 0x74e   :  { %2606 = vmatprep.subr.bf16.mxu1 %v3113_v32 }
 0x751   :  { %2608 = vmatpush3.bf16.msra.mxu1 %v3113_v32 }
 0x817   :  { %v2338_v50 = vpop.f32.mrb[4].mxu1 }
 0x818   :  { %v855_v3 = vadd.f32 %v2338_v50, %v776_v45  ;;  %v849_v51 = vpop.f32.mrb[5].mxu1 }
 0x819   :  { %v850_v53 = vadd.f32 %v849_v51, %v776_v45 }
 0x81a   :  { %v859_v54 = vadd.f32 %v855_v3, %v685_v34  ;;  %v898_v34 = vsub.s32 7, %v3028_v21  ;;  %v3192_v3 = vld [vmem:[#allocation5 + $0x148] sm:$0xff]  ;;  %v2932_v21 = vmov 0.0  }
 0x81b   :  { %v858_v6 = vadd.f32 %v850_v53, %v684_v38  ;;  %v926_v51 = vrot.slane %v3192_v3, %v3031_v22 }
 0x81c   :  { %v863_v55 = vsel %vm108_vm0, %v859_v54, 0.0  ;;  %v869_v56 = vmul.f32 %v859_v54, %v859_v54  ;;  %v899_v46 = vrot.slane %v3035_v24, %v898_v34 }
 0x81d   :  { %864 = vadd.xlane.f32.xlu0 %v863_v55  ;;  %v860_v27 = vsel %vm108_vm0, %v858_v6, 0.0  ;;  %v868_v57 = vmul.f32 %v858_v6, %v858_v6 }
 0x81e   :  { %861 = vadd.xlane.f32.xlu1 %v860_v27  ;;  %v873_v32 = vsel %vm108_vm0, %v869_v56, 0.0 }
 0x81f   :  { %v870_v58 = vsel %vm108_vm0, %v868_v57, 0.0 }
 0x821   :  { %874 = vadd.xlane.f32.xlu0 %v873_v32 }
 0x822   :  { %871 = vadd.xlane.f32.xlu1 %v870_v58 }
 0x8aa   :  { %v865_v1 = vpop.xlane.xlu0 %864 }
 0x8ab   :  { %v867_v2 = vmul.f32 0.03125, %v865_v1  ;;  %v862_v4 = vpop.xlane.xlu1 %861 }
 0x8ac   :  { %v866_v9 = vmul.f32 0.03125, %v862_v4 }
 0x8ad   :  { %v879_v15 = vmul.f32 %v867_v2, %v867_v2  ;;  %v883_v40 = vsub.f32 %v859_v54, %v867_v2 }
 0x8ae   :  { %v875_v13 = vpop.xlane.xlu0 %874  ;;  %v878_v29 = vmul.f32 %v866_v9, %v866_v9  ;;  %v882_v33 = vsub.f32 %v858_v6, %v866_v9 }
 0x8af   :  { %v877_v18 = vmul.f32 0.03125, %v875_v13  ;;  %v872_v26 = vpop.xlane.xlu1 %871 }
 0x8b0   :  { %v876_v30 = vmul.f32 0.03125, %v872_v26 }
 0x8b1   :  { %v881_v35 = vsub.f32 %v877_v18, %v879_v15 }
 0x8b2   :  { %v880_v36 = vsub.f32 %v876_v30, %v878_v29 }
 0x8b3   :  { %v885_v37 = vadd.f32 1e-05, %v881_v35 }
 0x8b4   :  { %v884_v38 = vadd.f32 1e-05, %v880_v36 }
 0x8b5   :  { %2808 = vrsqrt.f32 %v885_v37 }
 0x8b6   :  { %2810 = vrsqrt.f32 %v884_v38 }
 0x8bf   :  { %v2809_v41 = vpop.eup %2808 }
 0x8c0   :  { %v2811_v42 = vpop.eup %2810  ;;  %v889_v43 = vmul.f32 %v2809_v41, %v883_v40 }
 0x8c1   :  { %v888_v44 = vmul.f32 %v2811_v42, %v882_v33 }
 0x8c2   :  { %v895_v47 = vmul.f32 %v893_v11, %v889_v43 }
 0x8c3   :  { %v894_v48 = vmul.f32 %v893_v11, %v888_v44 }
 0x8c4   :  { %v3186_v50 = vadd.f32 %v899_v46, %v895_v47 }
 0x8c5   :  { %v3184_v45 = vadd.f32 %v899_v46, %v894_v48 }
 0x8c7   :  { %2347 = vmatprep.mubr.msk.f32.mxu0 %vm108_vm0, %v3184_v45 }
 0x8c8   :  { %2348 = vmatmul.mubr.msk.f32.vlgmr.msra.gmra.mrb[8].mxu0 %vm108_vm0, %v3186_v50 }
 0x99b   :  { %v2349_v53 = vpop.f32.mrb[8].mxu0 }
 0x99c   :  { %v1005_v54 = vadd.f32 %v2349_v53, %v926_v51  ;;  %v999_v24 = vpop.f32.mrb[9].mxu0 }
 0x99d   :  { %v1000_v6 = vadd.f32 %v999_v24, %v926_v51 }
 0x99e   :  { %v1013_v55 = vmul.f32 %v1005_v54, %v3024_v19  ;;  %v1011_v56 = vmul.f32 %v1005_v54, %v3026_v20  ;;  %v1015_v27 = vmul.f32 %v1005_v54, %v3033_v23  ;;  %v1017_v57 = vmul.f32 %v1005_v54, %v3041_v28 }
 0x99f   :  { %v1008_v32 = vmul.f32 0.35355338, %v1000_v6  ;;  %v1012_v58 = vmul.f32 %v1000_v6, %v3020_v16  ;;  %v1010_v59 = vmul.f32 %v1000_v6, %v3022_v17  ;;  %v1014_v60 = vmul.f32 %v1000_v6, %v3037_v25 }
 0x9a0   :  { %v1016_v61 = vmul.f32 %v1000_v6, %v3043_v31  ;;  %v1009_v30 = vmul.f32 0.35355338, %v1005_v54 }
 0x9a1   :  { %2366 = vmatprep.mubr.msk.f32.mxu0 %vm108_vm0, %v1008_v32  ;;  %v2761_v62 = vpack.i.bf16 %v1013_v55, %v1012_v58  ;;  %v2756_v63 = vpack.i.bf16 %v1011_v56, %v1010_v59  ;;  %v2766_v19 = vpack.i.bf16 %v1015_v27, %v1014_v60 }
 0x9a2   :  { %v2771_v0 = vpack.i.bf16 %v1017_v57, %v1016_v61  ;;  %v906_v61 = vld [vmem:[#allocation5 + $0xc8] sm:$0xff] }
 0x9a3   :  { %2762 = vrot.lane.b32.xlu0 %v2761_v62, %s2930_s27  ;;  %2757 = vrot.lane.b32.xlu1 %v2756_v63, %s2930_s27 }
 0x9a7   :  { %2767 = vrot.lane.b32.xlu1 %v2766_v19, %s2930_s27 }
 0x9ab   :  { %2772 = vrot.lane.b32.xlu1 %v2771_v0, %s2930_s27 }
 0xa15   :  { %v2763_v16 = vpop.permute.xlu0 %2762  ;;  %v2758_v17 = vpop.permute.xlu1 %2757 }
 0xa16   :  { %v2765_v20 = vunpack.i.h.bf16 %v2763_v16  ;;  %v2764_v23 = vunpack.i.l.bf16 %v2763_v16  ;;  %v2760_v25 = vunpack.i.h.bf16 %v2758_v17  ;;  %v2759_v28 = vunpack.i.l.bf16 %v2758_v17 }
 0xa18   :  { %v2569_v31 = vpack.c.bf16 %v2760_v25, %v2759_v28  ;;  %v2575_v1 = vpack.c.bf16 %v2765_v20, %v2764_v23 }
 0xa19   :  { %v2768_v2 = vpop.permute.xlu1 %2767 }
 0xa1a   :  { %2571 = vmatprep.subr.msk.bf16.mxu0 %vm3069_vm1, %v2569_v31  ;;  %v2770_v4 = vunpack.i.h.bf16 %v2768_v2  ;;  %v2769_v9 = vunpack.i.l.bf16 %v2768_v2 }
 0xa1b   :  { %2574 = vmatpush3.bf16.xpose.msk.msra.mxu0 %vm3069_vm1, %v2569_v31 }
 0xa1c   :  { %2577 = vmatprep.subr.msk.bf16.mxu0 %vm3069_vm1, %v2575_v1  ;;  %v2581_v13 = vpack.c.bf16 %v2770_v4, %v2769_v9  ;;  %v1344_v4 = vrot.slane %v3192_v3, %v3128_v14 }
 0xa1d   :  { %v2773_v15 = vpop.permute.xlu1 %2772 }
 0xa1e   :  { %v2775_v18 = vunpack.i.h.bf16 %v2773_v15  ;;  %v2774_v26 = vunpack.i.l.bf16 %v2773_v15 }
 0xa20   :  { %v2587_v29 = vpack.c.bf16 %v2775_v18, %v2774_v26 }
 0xa23   :  { %2580 = vmatpush3.bf16.xpose.msk.msra.mxu0 %vm3069_vm1, %v2575_v1 }
 0xa24   :  { %2583 = vmatprep.subr.msk.bf16.mxu0 %vm3069_vm1, %v2581_v13 }
 0xa2b   :  { %2586 = vmatpush3.bf16.xpose.msk.msra.mxu0 %vm3069_vm1, %v2581_v13 }
 0xa2c   :  { %2589 = vmatprep.subr.msk.bf16.mxu0 %vm3069_vm1, %v2587_v29 }
 0xa33   :  { %2592 = vmatpush3.bf16.xpose.msk.msra.mxu0 %vm3069_vm1, %v2587_v29 }
 0xa3a   :  { %2367 = vmatmul.mubr.msk.f32.vlgmr.msra.gmra.mrb[10].mxu0 %vm108_vm0, %v1009_v30 }
 0xb0d   :  { %v2368_v35 = vpop.f32.mrb[10].mxu0 }
 0xb0e   :  { %v1136_v36 = vadd.f32 %v2368_v35, %v3098_v7  ;;  %v1130_v37 = vpop.f32.mrb[11].mxu0 }
 0xb0f   :  { %v1131_v38 = vadd.f32 %v1130_v37, %v3100_v8 }
 0xb10   :  { %v1142_v40 = vsel %vm353_vm2, %v1136_v36, -inf }
 0xb11   :  { %1143 = vmax.xlane.f32.xlu1 %v1142_v40  ;;  %v1139_v11 = vsel %vm353_vm2, %v1131_v38, -inf }
 0xb12   :  { %1140 = vmax.xlane.f32.xlu0 %v1139_v11  ;;  %v910_v11 = vld [vmem:[#allocation5 + $0xe8] sm:$0xff] }
 0xb22   :  { %2782 = vrot.lane.b32.xlu1 %v2761_v62, %s2931_s28  ;;  %v907_v62 = vld [vmem:[#allocation5 + $0xd0] sm:$0xff] }
 0xb26   :  { %2792 = vrot.lane.b32.xlu1 %v2771_v0, %s2931_s28  ;;  %v909_v0 = vld [vmem:[#allocation5 + $0xe0] sm:$0xff] }
 0xb28   :  { %2777 = vrot.lane.b32.xlu0 %v2756_v63, %s2931_s28  ;;  %v908_v63 = vld [vmem:[#allocation5 + $0xd8] sm:$0xff] }
 0xb29   :  { %v2629_v16 = vpack.c.bf16 %v909_v0, %v908_v63 }
 0xb2c   :  { %2787 = vrot.lane.b32.xlu0 %v2766_v19, %s2931_s28  ;;  %v2625_v19 = vpack.c.bf16 %v907_v62, %v906_v61 }
 0xb2e   :  { %2626 = vmatprep.subr.bf16.mxu0 %v2625_v19 }
 0xb2f   :  { %2628 = vmatpush3.bf16.msra.mxu0 %v2625_v19  ;;  %v1461_v19 = vrot.slane %v3192_v3, %v676_v10 }
 0xb30   :  { %2630 = vmatprep.subr.bf16.mxu0 %v2629_v16 }
 0xb33   :  { %2632 = vmatpush3.bf16.msra.mxu0 %v2629_v16 }
 0xb9e   :  { %v1144_v52 = vpop.xlane.xlu1 %1143 }
 0xb9f   :  { %v1146_v41 = vsub.f32 %v1136_v36, %v1144_v52  ;;  %v1141_v7 = vpop.xlane.xlu0 %1140  ;;  %v911_v52 = vld [vmem:[#allocation5 + $0xf0] sm:$0xff] }
 0xba0   :  { %v1145_v33 = vsub.f32 %v1131_v38, %v1141_v7 }
 0xba1   :  { %v1149_v42 = vmul.f32 1.442695, %v1146_v41  ;;  %v2633_v41 = vpack.c.bf16 %v911_v52, %v910_v11 }
 0xba2   :  { %v1147_v8 = vmul.f32 1.442695, %v1145_v33  ;;  %v2783_v48 = vpop.permute.xlu1 %2782  ;;  %v914_v33 = vld [vmem:[#allocation5 + $0x108] sm:$0xff] }
 0xba3   :  { %v2778_v43 = vpop.permute.xlu0 %2777  ;;  %v2785_v51 = vunpack.i.h.bf16 %v2783_v48  ;;  %v2784_v53 = vunpack.i.l.bf16 %v2783_v48  ;;  %v919_v48 = vld [vmem:[#allocation5 + $0x130] sm:$0xff] }
 0xba4   :  { %2812 = vpow2.f32 %v1147_v8  ;;  %v2780_v44 = vunpack.i.h.bf16 %v2778_v43  ;;  %v2779_v46 = vunpack.i.l.bf16 %v2778_v43  ;;  %v916_v8 = vld [vmem:[#allocation5 + $0x118] sm:$0xff] }
 0xba5   :  { %2814 = vpow2.f32 %v1149_v42  ;;  %v2613_v55 = vpack.c.bf16 %v2785_v51, %v2784_v53  ;;  %v915_v42 = vld [vmem:[#allocation5 + $0x110] sm:$0xff] }
 0xba6   :  { %v2609_v47 = vpack.c.bf16 %v2780_v44, %v2779_v46  ;;  %v2793_v57 = vpop.permute.xlu1 %2792  ;;  %v2641_v43 = vpack.c.bf16 %v915_v42, %v914_v33  ;;  %v917_v44 = vld [vmem:[#allocation5 + $0x120] sm:$0xff] }
 0xba7   :  { %v2788_v54 = vpop.permute.xlu0 %2787  ;;  %v2795_v32 = vunpack.i.h.bf16 %v2793_v57  ;;  %v2794_v58 = vunpack.i.l.bf16 %v2793_v57  ;;  %v2645_v46 = vpack.c.bf16 %v917_v44, %v916_v8 }
 0xba8   :  { %2610 = vmatprep.subr.bf16.mxu1 %v2609_v47  ;;  %v2790_v56 = vunpack.i.h.bf16 %v2788_v54  ;;  %v2789_v27 = vunpack.i.l.bf16 %v2788_v54  ;;  %2642 = vmatprep.subr.bf16.mxu0 %v2641_v43 }
 0xba9   :  { %v2621_v60 = vpack.c.bf16 %v2795_v32, %v2794_v58 }
 0xbaa   :  { %v2617_v59 = vpack.c.bf16 %v2790_v56, %v2789_v27 }
 0xbae   :  { %v2813_v24 = vpop.eup %2812 }
 0xbaf   :  { %v2815_v6 = vpop.eup %2814  ;;  %2385 = vmatprep.mubr.msk.f32.mxu1 %vm353_vm2, %v2813_v24 }
 0xbb0   :  { %2386 = vmatmul.mubr.msk.f32.vlgmr.msra.gmra.mrb[6].mxu1 %vm353_vm2, %v2815_v6 }
 0xbb1   :  { %2612 = vmatpush3.bf16.msra.mxu1 %v2609_v47  ;;  %v918_v47 = vld [vmem:[#allocation5 + $0x128] sm:$0xff] }
 0xbb2   :  { %2614 = vmatprep.subr.bf16.mxu1 %v2613_v55  ;;  %v2649_v51 = vpack.c.bf16 %v919_v48, %v918_v47 }
 0xbb5   :  { %2616 = vmatpush3.bf16.msra.mxu1 %v2613_v55 }
 0xbb6   :  { %2618 = vmatprep.subr.bf16.mxu1 %v2617_v59 }
 0xbb9   :  { %2620 = vmatpush3.bf16.msra.mxu1 %v2617_v59 }
 0xbba   :  { %2622 = vmatprep.subr.bf16.mxu1 %v2621_v60 }
 0xbbd   :  { %2624 = vmatpush3.bf16.msra.mxu1 %v2621_v60 }
 0xbbe   :  { %2634 = vmatprep.subr.bf16.mxu1 %v2633_v41 }
 0xc83   :  { %v2387_v17 = vpop.f32.mrb[6].mxu1 }
 0xc84   :  { %2816 = vrcp.f32 %v2387_v17  ;;  %v1223_v20 = vpop.f32.mrb[7].mxu1  ;;  %v1467_v17 = vrot.slane %v3192_v3, %v682_v12  ;;  %v1473_v12 = vrot.slane %v3192_v3, %v688_v5 }
 0xc85   :  { %2818 = vrcp.f32 %v1223_v20 }
 0xc8e   :  { %v2817_v23 = vpop.eup %2816 }
 0xc8f   :  { %v2819_v25 = vpop.eup %2818  ;;  %v1235_v31 = vmul.f32 %v2817_v23, %v2815_v6 }
 0xc90   :  { %v1234_v28 = vmul.f32 %v2819_v25, %v2813_v24 }
 0xc92   :  { %2404 = vmatprep.mubr.msk.f32.mxu1 %vm353_vm2, %v1234_v28 }
 0xc93   :  { %2405 = vmatmul.mubr.msk.f32.vlgmr.msra.gmra.mrb[8].mxu1 %vm353_vm2, %v1235_v31 }
 0xc94   :  { %2636 = vmatpush3.bf16.msra.mxu1 %v2633_v41 }
 0xd66   :  { %v2406_v1 = vpop.f32.mrb[8].mxu1 }
 0xd67   :  { %v1332_v2 = vpop.f32.mrb[9].mxu1 }
 0xd68   :  { %2415 = vmatprep.mubr.msk.f32.mxu0 %vm108_vm0, %v1332_v2 }
 0xd69   :  { %2416 = vmatmul.mubr.msk.f32.vlgmr.msra.gmra.mrb[12].mxu0 %vm108_vm0, %v2406_v1 }
 0xd6a   :  { %2644 = vmatpush3.bf16.msra.mxu0 %v2641_v43 }
 0xd6b   :  { %2646 = vmatprep.subr.bf16.mxu0 %v2645_v46 }
 0xd6e   :  { %2648 = vmatpush3.bf16.msra.mxu0 %v2645_v46 }
 0xd6f   :  { %2650 = vmatprep.subr.bf16.mxu0 %v2649_v51 }
 0xd72   :  { %2652 = vmatpush3.bf16.msra.mxu0 %v2649_v51 }
 0xe3c   :  { %v2417_v9 = vpop.f32.mrb[12].mxu0 }
 0xe3d   :  { %v1423_v13 = vadd.f32 %v2417_v9, %v1344_v4  ;;  %v1417_v15 = vpop.f32.mrb[13].mxu0  ;;  %v921_v9 = vld [vmem:[#allocation5 + $0x140] sm:$0xff] }
 0xe3e   :  { %v1418_v18 = vadd.f32 %v1417_v15, %v1344_v4  ;;  %v920_v4 = vld [vmem:[#allocation5 + $0x138] sm:$0xff] }
 0xe3f   :  { %v1427_v26 = vadd.f32 %v1423_v13, %v3186_v50  ;;  %v912_v50 = vld [vmem:[#allocation5 + $0xf8] sm:$0xff]  ;;  %v2653_v10 = vpack.c.bf16 %v921_v9, %v920_v4  ;;  %v1825_v4 = vld [vmem:[#allocation5 + $0x290] sm:$0xff] }
 0xe40   :  { %v1426_v29 = vadd.f32 %v1418_v18, %v3184_v45  ;;  %v913_v45 = vld [vmem:[#allocation5 + $0x100] sm:$0xff] }
 0xe41   :  { %v1431_v30 = vsel %vm108_vm0, %v1427_v26, 0.0  ;;  %v1437_v38 = vmul.f32 %v1427_v26, %v1427_v26  ;;  %v2637_v7 = vpack.c.bf16 %v913_v45, %v912_v50  ;;  %2654 = vmatprep.subr.bf16.mxu0 %v2653_v10 }
 0xe42   :  { %1432 = vadd.xlane.f32.xlu1 %v1431_v30  ;;  %v1428_v35 = vsel %vm108_vm0, %v1426_v29, 0.0  ;;  %v1436_v36 = vmul.f32 %v1426_v29, %v1426_v29  ;;  %2656 = vmatpush3.bf16.msra.mxu0 %v2653_v10 }
 0xe43   :  { %1429 = vadd.xlane.f32.xlu0 %v1428_v35  ;;  %v1441_v40 = vsel %vm108_vm0, %v1437_v38, 0.0  ;;  %2638 = vmatprep.subr.bf16.mxu1 %v2637_v7  ;;  %v1560_v35 = vrot.slane %v3192_v3, %v775_v49 }
 0xe44   :  { %v1438_v37 = vsel %vm108_vm0, %v1436_v36, 0.0  ;;  %2640 = vmatpush3.bf16.msra.mxu1 %v2637_v7 }
 0xe47   :  { %1439 = vadd.xlane.f32.xlu0 %v1438_v37 }
 0xe4b   :  { %1442 = vadd.xlane.f32.xlu0 %v1441_v40 }
 0xecf   :  { %v1433_v24 = vpop.xlane.xlu1 %1432 }
 0xed0   :  { %v1430_v53 = vpop.xlane.xlu0 %1429  ;;  %v1435_v55 = vmul.f32 0.03125, %v1433_v24 }
 0xed1   :  { %v1434_v54 = vmul.f32 0.03125, %v1430_v53 }
 0xed2   :  { %v1447_v58 = vmul.f32 %v1435_v55, %v1435_v55  ;;  %v1451_v20 = vsub.f32 %v1427_v26, %v1435_v55 }
 0xed3   :  { %v1446_v56 = vmul.f32 %v1434_v54, %v1434_v54  ;;  %v1450_v63 = vsub.f32 %v1426_v29, %v1434_v54 }
 0xed4   :  { %v1440_v6 = vpop.xlane.xlu0 %1439 }
 0xed5   :  { %v1444_v27 = vmul.f32 0.03125, %v1440_v6 }
 0xed7   :  { %v1448_v57 = vsub.f32 %v1444_v27, %v1446_v56  ;;  %v1677_v27 = vrot.slane %v3192_v3, %v892_v39 }
 0xed8   :  { %v1443_v32 = vpop.xlane.xlu0 %1442 }
 0xed9   :  { %v1452_v59 = vadd.f32 1e-05, %v1448_v57  ;;  %v1445_v60 = vmul.f32 0.03125, %v1443_v32 }
 0xedb   :  { %2820 = vrsqrt.f32 %v1452_v59  ;;  %v1449_v61 = vsub.f32 %v1445_v60, %v1447_v58  ;;  %v1683_v60 = vrot.slane %v3192_v3, %v898_v34  ;;  %v1820_v34 = vld [vmem:[#allocation5 + $0x268] sm:$0xff]  ;;  %v1821_v3 = vld [vmem:[#allocation5 + $0x270] sm:$0xff] }
 0xedd   :  { %v1453_v62 = vadd.f32 1e-05, %v1449_v61 }
 0xedf   :  { %2822 = vrsqrt.f32 %v1453_v62 }
 0xee5   :  { %v2821_v0 = vpop.eup %2820 }
 0xee6   :  { %v1456_v16 = vmul.f32 %v2821_v0, %v1450_v63  ;;  %v1804_v0 = vld [vmem:[#allocation5 + $0x1e8] sm:$0xff] }
 0xee8   :  { %v1462_v23 = vmul.f32 %v1461_v19, %v1456_v16  ;;  %v2661_v16 = vpack.c.bf16 %v1821_v3, %v1820_v34 }
 0xee9   :  { %v2823_v25 = vpop.eup %2822 }
 0xeea   :  { %v1457_v28 = vmul.f32 %v2823_v25, %v1451_v20  ;;  %v1468_v31 = vadd.f32 %v1467_v17, %v1462_v23  ;;  %v1822_v20 = vld [vmem:[#allocation5 + $0x278] sm:$0xff]  ;;  %v1823_v23 = vld [vmem:[#allocation5 + $0x280] sm:$0xff]  ;;  %2662 = vmatprep.subr.bf16.mxu1 %v2661_v16 }
 0xeec   :  { %v1463_v1 = vmul.f32 %v1461_v19, %v1457_v28  ;;  %2426 = vmatprep.mubr.msk.f32.mxu1 %vm108_vm0, %v1468_v31  ;;  %v2665_v28 = vpack.c.bf16 %v1823_v23, %v1822_v20 }
 0xeee   :  { %v1469_v2 = vadd.f32 %v1467_v17, %v1463_v1  ;;  %v1805_v17 = vld [vmem:[#allocation5 + $0x1f0] sm:$0xff]  ;;  %v1807_v1 = vld [vmem:[#allocation5 + $0x200] sm:$0xff] }
 0xeef   :  { %v2663_v25 = vpack.c.bf16 %v1805_v17, %v1804_v0 }
 0xef0   :  { %2427 = vmatmul.mubr.msk.f32.vlgmr.msra.gmra.mrb[10].mxu1 %vm108_vm0, %v1469_v2 }
 0xef1   :  { %2664 = vmatpush3.bf16.msra.mxu1 %v2663_v25  ;;  %v1818_v25 = vld [vmem:[#allocation5 + $0x258] sm:$0xff] }
 0xef2   :  { %2666 = vmatprep.subr.bf16.mxu1 %v2665_v28  ;;  %v1819_v28 = vld [vmem:[#allocation5 + $0x260] sm:$0xff] }
 0xfc3   :  { %v2428_v13 = vpop.f32.mrb[10].mxu1 }
 0xfc4   :  { %v1552_v15 = vadd.f32 %v2428_v13, %v1473_v12  ;;  %v1546_v18 = vpop.f32.mrb[11].mxu1  ;;  %v1809_v13 = vld [vmem:[#allocation5 + $0x210] sm:$0xff] }
 0xfc5   :  { %v1547_v26 = vadd.f32 %v1546_v18, %v1473_v12  ;;  %v1808_v12 = vld [vmem:[#allocation5 + $0x208] sm:$0xff]  ;;  %v1827_v18 = vld [vmem:[#allocation5 + $0x2a0] sm:$0xff] }
 0xfc6   :  { %v1556_v30 = vmax.f32 %v1552_v15, 0.0  ;;  %v1826_v15 = vld [vmem:[#allocation5 + $0x298] sm:$0xff] }
 0xfc7   :  { %v1555_v29 = vmax.f32 %v1547_v26, 0.0  ;;  %v2671_v26 = vpack.c.bf16 %v1809_v13, %v1808_v12  ;;  %v1839_v12 = vld [vmem:[#allocation5 + $0x300] sm:$0xff] }
 0xfc9   :  { %2445 = vmatprep.mubr.msk.f32.mxu0 %vm353_vm2, %v1555_v29  ;;  %v2673_v29 = vpack.c.bf16 %v1827_v18, %v1826_v15 }
 0xfca   :  { %2446 = vmatmul.mubr.msk.f32.vlgmr.msra.gmra.mrb[14].mxu0 %vm353_vm2, %v1556_v30  ;;  %v1810_v30 = vld [vmem:[#allocation5 + $0x218] sm:$0xff] }
 0xfcb   :  { %1785 = vmatprep.mubr.f32.mxu0 %v2932_v21 }
0x109d   :  { %v2447_v36 = vpop.f32.mrb[14].mxu0 }
0x109e   :  { %v1639_v37 = vadd.f32 %v2447_v36, %v1560_v35  ;;  %v1633_v38 = vpop.f32.mrb[15].mxu0  ;;  %v1828_v36 = vld [vmem:[#allocation5 + $0x2a8] sm:$0xff] }
0x109f   :  { %v1634_v40 = vadd.f32 %v1633_v38, %v1560_v35  ;;  %v1811_v35 = vld [vmem:[#allocation5 + $0x220] sm:$0xff] }
0x10a0   :  { %v1643_v11 = vadd.f32 %v1639_v37, %v1469_v2  ;;  %v1824_v2 = vld [vmem:[#allocation5 + $0x288] sm:$0xff]  ;;  %v1829_v37 = vld [vmem:[#allocation5 + $0x2b0] sm:$0xff]  ;;  %v2675_v38 = vpack.c.bf16 %v1811_v35, %v1810_v30 }
0x10a1   :  { %v1642_v5 = vadd.f32 %v1634_v40, %v1468_v31  ;;  %v1806_v31 = vld [vmem:[#allocation5 + $0x1f8] sm:$0xff]  ;;  %v2669_v10 = vpack.c.bf16 %v1825_v4, %v1824_v2  ;;  %v2677_v40 = vpack.c.bf16 %v1829_v37, %v1828_v36  ;;  %v1837_v2 = vld [vmem:[#allocation5 + $0x2f0] sm:$0xff]  ;;  %v1843_v37 = vld [vmem:[#allocation5 + $0x320] sm:$0xff] }
0x10a2   :  { %v1647_v52 = vsel %vm108_vm0, %v1643_v11, 0.0  ;;  %v1653_v41 = vmul.f32 %v1643_v11, %v1643_v11  ;;  %v2667_v9 = vpack.c.bf16 %v1807_v1, %v1806_v31  ;;  %v2691_v31 = vpack.c.bf16 %v1819_v28, %v1818_v25  ;;  %v1836_v1 = vld [vmem:[#allocation5 + $0x2e8] sm:$0xff]  ;;  %v1838_v4 = vld [vmem:[#allocation5 + $0x2f8] sm:$0xff]  ;;  %v1841_v30 = vld [vmem:[#allocation5 + $0x310] sm:$0xff] }
0x10a3   :  { %1648 = vadd.xlane.f32.xlu0 %v1647_v52  ;;  %v1644_v50 = vsel %vm108_vm0, %v1642_v5, 0.0  ;;  %v1652_v45 = vmul.f32 %v1642_v5, %v1642_v5  ;;  %v1830_v52 = vld [vmem:[#allocation5 + $0x2b8] sm:$0xff]  ;;  %v2697_v13 = vpack.c.bf16 %v1839_v12, %v1838_v4 }
0x10a4   :  { %1645 = vadd.xlane.f32.xlu1 %v1644_v50  ;;  %v1657_v7 = vsel %vm108_vm0, %v1653_v41, 0.0  ;;  %2668 = vmatpush3.bf16.msra.mxu1 %v2667_v9  ;;  %v1831_v41 = vld [vmem:[#allocation5 + $0x2c0] sm:$0xff]  ;;  %v2933_v9 = vmov 0.0|0.0   ;;  %v1842_v36 = vld [vmem:[#allocation5 + $0x318] sm:$0x3] }
0x10a5   :  { %v1654_v33 = vsel %vm108_vm0, %v1652_v45, 0.0  ;;  %2670 = vmatprep.subr.bf16.mxu1 %v2669_v10  ;;  %v2681_v45 = vpack.c.bf16 %v1831_v41, %v1830_v52  ;;  %v2694_v10 = vpack.c.bf16 %v1837_v2, %v1836_v1 }
0x10a7   :  { %1658 = vadd.xlane.f32.xlu0 %v1657_v7  ;;  %v1814_v7 = vld [vmem:[#allocation5 + $0x238] sm:$0xff] }
0x10a8   :  { %1655 = vadd.xlane.f32.xlu1 %v1654_v33  ;;  %2672 = vmatpush3.bf16.msra.mxu1 %v2671_v26  ;;  %v1815_v33 = vld [vmem:[#allocation5 + $0x240] sm:$0xff] }
0x10a9   :  { %2674 = vmatprep.subr.bf16.mxu1 %v2673_v29  ;;  %v1840_v29 = vld [vmem:[#allocation5 + $0x308] sm:$0xff] }
0x10aa   :  { %v2700_v35 = vpack.c.bf16 %v1841_v30, %v1840_v29 }
0x10ac   :  { %2676 = vmatpush3.bf16.msra.mxu1 %v2675_v38 }
0x10ad   :  { %2678 = vmatprep.subr.bf16.mxu1 %v2677_v40  ;;  %v1847_v40 = vrot.slane %v1843_v37, %v3031_v22 }
0x1130   :  { %v1649_v49 = vpop.xlane.xlu0 %1648 }
0x1131   :  { %v1651_v42 = vmul.f32 0.03125, %v1649_v49  ;;  %v1646_v8 = vpop.xlane.xlu1 %1645  ;;  %v1832_v49 = vld [vmem:[#allocation5 + $0x2c8] sm:$0xff] }
0x1132   :  { %v1650_v43 = vmul.f32 0.03125, %v1646_v8  ;;  %v2683_v8 = vpack.c.bf16 %v1815_v33, %v1814_v7 }
0x1133   :  { %v1663_v46 = vmul.f32 %v1651_v42, %v1651_v42  ;;  %v1667_v56 = vsub.f32 %v1643_v11, %v1651_v42  ;;  %v1812_v11 = vld [vmem:[#allocation5 + $0x228] sm:$0xff]  ;;  %v1833_v42 = vld [vmem:[#allocation5 + $0x2d0] sm:$0xff] }
0x1134   :  { %v1659_v44 = vpop.xlane.xlu0 %1658  ;;  %v1662_v51 = vmul.f32 %v1650_v43, %v1650_v43  ;;  %v1666_v32 = vsub.f32 %v1642_v5, %v1650_v43  ;;  %v1813_v5 = vld [vmem:[#allocation5 + $0x230] sm:$0xff]  ;;  %v2685_v43 = vpack.c.bf16 %v1833_v42, %v1832_v49 }
0x1135   :  { %v1661_v47 = vmul.f32 0.03125, %v1659_v44  ;;  %v1656_v48 = vpop.xlane.xlu1 %1655  ;;  %v2679_v50 = vpack.c.bf16 %v1813_v5, %v1812_v11  ;;  %v1816_v44 = vld [vmem:[#allocation5 + $0x248] sm:$0xff] }
0x1136   :  { %v1660_v53 = vmul.f32 0.03125, %v1656_v48  ;;  %v1835_v48 = vld [vmem:[#allocation5 + $0x2e0] sm:$0xff] }
0x1137   :  { %v1665_v54 = vsub.f32 %v1661_v47, %v1663_v46  ;;  %2680 = vmatpush3.bf16.msra.mxu1 %v2679_v50  ;;  %v1817_v46 = vld [vmem:[#allocation5 + $0x250] sm:$0xff]  ;;  %v1834_v47 = vld [vmem:[#allocation5 + $0x2d8] sm:$0xff] }
0x1138   :  { %v1664_v24 = vsub.f32 %v1660_v53, %v1662_v51  ;;  %2682 = vmatprep.subr.bf16.mxu1 %v2681_v45  ;;  %v2687_v51 = vpack.c.bf16 %v1817_v46, %v1816_v44  ;;  %v2689_v53 = vpack.c.bf16 %v1835_v48, %v1834_v47 }
0x1139   :  { %v1669_v6 = vadd.f32 1e-05, %v1665_v54 }
0x113a   :  { %v1668_v55 = vadd.f32 1e-05, %v1664_v24 }
0x113b   :  { %2824 = vrsqrt.f32 %v1669_v6  ;;  %2684 = vmatpush3.bf16.msra.mxu1 %v2683_v8 }
0x113c   :  { %2826 = vrsqrt.f32 %v1668_v55  ;;  %2686 = vmatprep.subr.bf16.mxu1 %v2685_v43 }
0x113f   :  { %2688 = vmatpush3.bf16.msra.mxu1 %v2687_v51 }
0x1140   :  { %2690 = vmatprep.subr.bf16.mxu1 %v2689_v53 }
0x1143   :  { %2692 = vmatpush3.bf16.msra.mxu1 %v2691_v31 }
0x1145   :  { %v2825_v57 = vpop.eup %2824 }
0x1146   :  { %v2827_v58 = vpop.eup %2826  ;;  %v1673_v59 = vmul.f32 %v2825_v57, %v1667_v56 }
0x1147   :  { %v1672_v61 = vmul.f32 %v2827_v58, %v1666_v32  ;;  %v77_v58 = vld [vmem:[#allocation7] sm:$0xff] }
0x1148   :  { %v1679_v62 = vmul.f32 %v1677_v27, %v1673_v59  ;;  %v78_v59 = vld [vmem:[#allocation7 + $0x8] sm:$0xff] }
0x1149   :  { %v1678_v19 = vmul.f32 %v1677_v27, %v1672_v61  ;;  %v79_v61 = vld [vmem:[#allocation7 + $0x10] sm:$0xff] }
0x114a   :  { %v3274_v63 = vadd.f32 %v1683_v60, %v1679_v62  ;;  %v80_v62 = vld [vmem:[#allocation7 + $0x18] sm:$0xff] }
0x114b   :  { %v3280_v39 = vadd.f32 %v1683_v60, %v1678_v19 }
0x114c   :  { %1690 = vrot.lane.b32.xlu0 %v3274_v63, %s2929_s2  ;;  %1696 = vrot.lane.b32.xlu1 %v3274_v63, %s2931_s28 }
0x1150   :  { %1700 = vrot.lane.b32.xlu0 %v3280_v39, %s2930_s27  ;;  %1688 = vrot.lane.b32.xlu1 %v3280_v39, %s2929_s2 }
0x1154   :  { %1694 = vrot.lane.b32.xlu1 %v3280_v39, %s2931_s28 }
0x1158   :  { %1702 = vrot.lane.b32.xlu1 %v3274_v63, %s2930_s27 }
0x11be   :  { %v1697_v54 = vpop.permute.xlu1 %1696  ;;  %v1691_v24 = vpop.permute.xlu0 %1690 }
0x11bf   :  { %v1707_v27 = vsel %vm108_vm0, %v3274_v63, %v1691_v24  ;;  %v76_v63 = vld [vmem:[#allocation5 + $0x1e0] sm:$0x3] }
0x11c0   :  { %v1709_v19 = vsel %vm353_vm2, %v1707_v27, %v1697_v54 }
0x11c2   :  { %v1689_v6 = vpop.permute.xlu1 %1688  ;;  %v1701_v32 = vpop.permute.xlu0 %1700 }
0x11c3   :  { %v1706_v55 = vsel %vm108_vm0, %v3280_v39, %v1689_v6 }
0x11c6   :  { %v1695_v56 = vpop.permute.xlu1 %1694 }
0x11c7   :  { %v1708_v57 = vsel %vm353_vm2, %v1706_v55, %v1695_v56 }
0x11c8   :  { %v1711_v60 = vsel %vm1710_vm3, %v1708_v57, %v1701_v32 }
0x11c9   :  { %v1713_v0 = vmul.f32 %v1711_v60, %v77_v58  ;;  %v1714_v16 = vmul.f32 %v1711_v60, %v78_v59 }
0x11ca   :  { %v1703_v34 = vpop.permute.xlu1 %1702 }
0x11cb   :  { %v1712_v3 = vsel %vm1710_vm3, %v1709_v19, %v1703_v34 }
0x11cc   :  { %v1715_v39 = vmul.f32 %v1712_v3, %v79_v61  ;;  %v1716_v17 = vmul.f32 %v1712_v3, %v80_v62 }
0x11ce   :  { %v2659_v20 = vpack.c.bf16 %v1715_v39, %v1713_v0  ;;  %v2657_v23 = vpack.c.bf16 %v1716_v17, %v1714_v16 }
0x11d0   :  { %2658 = vmatprep.subr.bf16.mxu0 %v2657_v23 }
0x11d1   :  { %2660 = vmatpush1.bf16.msra.mxu0 %v2659_v20 }
0x11d2   :  { %2693 = vmatprep.subr.bf16.mxu0 %v2933_v9 }
0x11d4   :  { %2067 = vmatmul.mubr.msk.f32.vlgmr.msra.gmra.mrb[16].mxu0 %vm1717_vm4, %v76_v63 }
0x11d5   :  { %2695 = vmatpush3.bf16.msra.mxu0 %v2694_v10  ;;  %2462 = vmatprep.mubr.msk.f32.mxu0 %vm2934_vm6, %v2932_v21 }
0x11d6   :  { %2696 = vmatprep.subr.bf16.mxu0 %v2933_v9 }
0x11d9   :  { %2698 = vmatpush3.bf16.msra.mxu0 %v2697_v13 }
0x11da   :  { %2699 = vmatprep.subr.bf16.mxu0 %v2933_v9 }
0x11dd   :  { %2701 = vmatpush3.bf16.msra.mxu0 %v2700_v35 }
0x11de   :  { %2460 = vmatprep.subr.mxu0 %v2932_v21 }
0x11e1   :  { %2461 = vmatpush3.msk.msra.mxu0 %vm1927_vm5, %v1842_v36 }
0x12a7   :  { %v1787_v15 = vpop.f32.mrb[16].mxu0 }
0x12a8   :  { %v1789_v18 = vpop.f32.mrb[17].mxu0 }
0x12a9   :  { %v1794_v26 = vcombine.low %v1787_v15, %v1789_v18  ;;  %1912 = vmatprep.mubr.f32.mxu1 %v1789_v18 }
0x12aa   :  { %1913 = vmatmul.mubr.f32.vlgmr.msra.gmra.mrb[12].mxu1 %v1787_v15 }
0x12ab   :  { %2068 = vst.sshfl [vmem:[#allocation8] sm:$0x33 pattern:$0x76325410] %v1794_v26 }
0x137d   :  { %v2219_v38 = vpop.f32.mrb[12].mxu1 }
0x137e   :  { %v2220_v11 = vpop.f32.mrb[13].mxu1 }
0x137f   :  { %v2221_v5 = vadd.f32 %v2220_v11, %v2219_v38 }
0x1381   :  { %v1915_v52 = vadd.f32 %v2221_v5, %v1847_v40 }
0x1383   :  { %v1918_v41 = vmax.f32 %v1915_v52, 0.0 }
0x1385   :  { %2463 = vmatmul.mubr.msk.f32.vlgmr.msra.gmra.mrb[18].mxu0 %vm1923_vm7, %v1918_v41 }
0x1386   :  { %2905 = shalt.err (!%p2902_p0)
}
0x1387   :  { %s2906_s8 = scalar_lea.hbm %s3320_s4, 64 }
0x1388   :  { %p2907_p1 = scmp.ne.s32.totalorder %s3320_s4, %s2906_s8  ;;  %p2910_p2 = scmp.lt.u32.totalorder %s2906_s8, %s3320_s4 }
0x138a   :  { %p2912_p3 = pnand %p2910_p2, %p2907_p1 }
0x138c   :  { %2915 = shalt.err (!%p2912_p3)
}
0x138d   :  { %2014 = dma.vmem_to_hbm [thread:$0]  %s2012_s30, 64, %s3320_s4, [#allocation4]   ;;  %v1922_v22 = vrot.slane %v1843_v37, %v3128_v14  ;;  %vm2001_vm8 = vcmask 1024  }
0x1458   :  { %v1997_v21 = vpop.f32.mrb[18].mxu0 }
0x1459   :  { %v1998_v50 = vadd.f32 %v1997_v21, %v1922_v22  ;;  %v2464_v45 = vpop.f32.mrb[19].mxu0 }
0x145b   :  { %2002 = vst.msk [vmem:[%s3319_s3] sm:$0x3] %vm2001_vm8, %v1998_v50 }
0x145c   :  { %2920 = dma.done.wait [#allocation4], 64  }
0x145d   :  { %2921 = vsyncadd [#allocation4], 4294967232 }
0x145e   :  { %2020 = vsyncpa [#allocation3], 1 }
0x145f   :  { %2021 = vsyncpa [#allocation6], 1 }
0x1460   :  { %2022 = vsyncpa [#allocation4], 1 }

</bundles_post_ra>
